<compile_context>
chip_gen: v7x
topology: tpu7x:2x2x1
jax: 0.10.0
libtpu: 0.0.40
codegen_flags: <defaults>
</compile_context>

<pallas_src>
import math

import jax
import jax.numpy as jnp
from jax.experimental import pallas as pl
from jax.experimental.pallas import tpu as pltpu

# ----------------------------- model hyper-params -----------------------------
D_MODEL = 32
NUM_HEADS = 4
HEAD_DIM = D_MODEL // NUM_HEADS
EPS = 1e-5


# ------------------------------- Pallas kernel --------------------------------
def attention_block_kernel(
    x_ref,      # (BB, T, D)      input block (batch-blocked)
    wqkv_ref,   # (D+1, 3D)       rows 0..D-1: fused QKV weight (q pre-scaled); row D: bias
    wo_ref,     # (D+1, D)        rows 0..D-1: out_proj weight (transposed); row D: bias
    ln_ref,     # (2, D)          row 0: LayerNorm gamma, row 1: beta
    o_ref,      # (BB, T*D)       lane-dense output slab
    attn_sc,    # (BB*T, D) f32   VMEM scratch: concatenated head outputs
):
    BB, T, D = x_ref.shape
    N = BB * T
    H, hd = NUM_HEADS, HEAD_DIM

    # Fold the block's batch dim into the row dim; all dense ops run over BB*T rows.
    x2d = x_ref[...].reshape(N, D).astype(jnp.float32)

    # ---- fused QKV projection (single MXU pass; q scale already folded in) ----
    w_qkv = wqkv_ref[:D, :]                       # (D, 3D)
    b_qkv = wqkv_ref[D:D + 1, :]                  # (1, 3D)
    qkv = jnp.dot(x2d, w_qkv, preferred_element_type=jnp.float32) + b_qkv   # (N, 3D)

    # ---- per-head attention (H=4, trace-time unrolled; single-batch-dim einsums) ----
    # TODO(synk): batching the 4 heads into one (BB*H, T, hd) einsum needs a
    # minor-dim relayout; kept unrolled for robust Mosaic lowering.
    for h in range(H):
        q = qkv[:, h * hd:(h + 1) * hd].reshape(BB, T, hd)
        k = qkv[:, D + h * hd:D + (h + 1) * hd].reshape(BB, T, hd)
        v = qkv[:, 2 * D + h * hd:2 * D + (h + 1) * hd].reshape(BB, T, hd)

        s = jnp.einsum("bqd,bkd->bqk", q, k,
                       preferred_element_type=jnp.float32)                  # (BB, T, T)
        s = s - jnp.max(s, axis=-1, keepdims=True)
        p = jnp.exp(s)
        p = p * pl.reciprocal(jnp.sum(p, axis=-1, keepdims=True), approx=True)

        oh = jnp.einsum("bqk,bkd->bqd", p, v,
                        preferred_element_type=jnp.float32)                  # (BB, T, hd)

        # Assemble concatenated head outputs (static lane sub-slice store).
        attn_sc[:, h * hd:(h + 1) * hd] = oh.reshape(N, hd)

    # ---- fused output projection: one (N, D) @ (D, D) matmul ----
    attn = attn_sc[...]
    attn_out = jnp.dot(attn, wo_ref[:D, :],
                       preferred_element_type=jnp.float32) + wo_ref[D:D + 1, :]

    # ---- dropout (identity at inference) + residual + LayerNorm ----
    h1 = x2d + attn_out
    mu = jnp.mean(h1, axis=-1, keepdims=True)
    var = jnp.mean((h1 - mu) ** 2, axis=-1, keepdims=True)
    y = (h1 - mu) * jax.lax.rsqrt(var + EPS) * ln_ref[0:1, :] + ln_ref[1:2, :]

    # ---- lane-dense store: pack (BB, T, D) into the (BB, T*D) output slab ----
    y3 = y.reshape(BB, T, D).astype(o_ref.dtype)
    for t in range(T):
        o_ref[:, t * D:(t + 1) * D] = y3[:, t, :]


# -------------------------------- blocking ------------------------------------
def _num_tensorcores_per_chip():
    # v7x has 2 TensorCores per chip; v5e / v6e have 1.
    try:
        kind = jax.devices()[0].device_kind.lower()
        return 2 if ("v7" in kind or "7x" in kind) else 1
    except Exception:
        return 1


def _batch_blocking(B, cap=256):
    """Returns (BB, grid_steps); Bp = BB * grid_steps >= B (pad the remainder)."""
    ntc = _num_tensorcores_per_chip()
    if B <= cap and ntc == 1:
        return B, 1                      # single grid step: no pipeline overhead on 1-TC chips
    steps = max(ntc, pl.cdiv(B, cap))
    if ntc == 2 and steps % 2:           # keep both v7x TensorCores evenly loaded
        steps += 1
    BB = pl.cdiv(B, steps)
    BB = ((BB + 7) // 8) * 8             # keep the 2-D output block's sublane dim aligned
    return BB, steps


# -------------------------------- wrapper --------------------------------------
@jax.jit
def attention_blocks(x, params):
    B, T, D = x.shape
    assert D == D_MODEL

    # ---- pack / pre-transform parameters once in XLA (free per call) ----
    scale = 1.0 / math.sqrt(HEAD_DIM)
    in_w = params["in_w"].at[:D].multiply(scale)          # fold softmax scale into Wq
    in_b = params["in_b"].at[:D].multiply(scale)          # ... and into bq
    wqkv_pack = jnp.concatenate([in_w.T, in_b[None, :]], axis=0)          # (D+1, 3D)
    wo_pack = jnp.concatenate([params["out_w"].T, params["out_b"][None, :]], axis=0)  # (D+1, D)
    ln_pack = jnp.stack([params["gamma"], params["beta"]], axis=0)        # (2, D)

    # ---- batch blocking with cdiv + padding (no divisor cliff) ----
    BB, steps = _batch_blocking(B)
    Bp = BB * steps
    xp = x if Bp == B else jnp.pad(x, ((0, Bp - B), (0, 0), (0, 0)))

    out2d = pl.pallas_call(
        attention_block_kernel,
        out_shape=jax.ShapeDtypeStruct((Bp, T * D), x.dtype),
        grid=(steps,),
        in_specs=[
            pl.BlockSpec((BB, T, D), lambda b: (b, 0, 0)),       # x (batch-blocked)
            pl.BlockSpec((D + 1, 3 * D), lambda b: (0, 0)),      # fused QKV weight+bias
            pl.BlockSpec((D + 1, D), lambda b: (0, 0)),          # out_proj weight+bias
            pl.BlockSpec((2, D), lambda b: (0, 0)),              # LN gamma/beta
        ],
        out_specs=pl.BlockSpec((BB, T * D), lambda b: (b, 0)),   # lane-dense output slab
        scratch_shapes=[pltpu.VMEM((BB * T, D), jnp.float32)],
        compiler_params=pltpu.CompilerParams(
            dimension_semantics=("parallel",)),
    )(xp, wqkv_pack, wo_pack, ln_pack)

    return out2d[:B].reshape(B, T, D)


# --------------------------- pure-JAX reference ---------------------------------
def reference(x, p):
    B, T, D = x.shape
    qkv = x @ p["in_w"].T + p["in_b"]
    q, k, v = qkv[..., :D], qkv[..., D:2 * D], qkv[..., 2 * D:]

    def split(t):  # (B, T, D) -> (B, H, T, hd)
        return t.reshape(B, T, NUM_HEADS, HEAD_DIM).transpose(0, 2, 1, 3)

    qh, kh, vh = split(q), split(k), split(v)
    s = jnp.einsum("bhqd,bhkd->bhqk", qh, kh) / math.sqrt(HEAD_DIM)
    pw = jax.nn.softmax(s, axis=-1)
    a = jnp.einsum("bhqk,bhkd->bhqd", pw, vh)
    a = a.transpose(0, 2, 1, 3).reshape(B, T, D)
    a = a @ p["out_w"].T + p["out_b"]

    h1 = x + a  # dropout identity at inference
    mu = jnp.mean(h1, axis=-1, keepdims=True)
    var = jnp.mean((h1 - mu) ** 2, axis=-1, keepdims=True)
    return (h1 - mu) * jax.lax.rsqrt(var + EPS) * p["gamma"] + p["beta"]


# ---------------------------------- main ----------------------------------------
if __name__ == "__main__":
    key = jax.random.PRNGKey(0)
    keys = jax.random.split(key, 8)
    B, T, D = 8, 8, D_MODEL

    x = jax.random.normal(keys[0], (B, T, D), dtype=jnp.float32)

    def init(k, shape, scale=0.1):
        return (scale * jax.random.normal(k, shape)).astype(jnp.float32)

    params = {
        "in_w":  init(keys[1], (3 * D, D)),
        "in_b":  init(keys[2], (3 * D,)),
        "out_w": init(keys[3], (D, D)),
        "out_b": init(keys[4], (D,)),
        "gamma": (1.0 + 0.1 * jax.random.normal(keys[5], (D,))).astype(jnp.float32),
        "beta":  init(keys[6], (D,)),
    }

    out = attention_blocks(x, params)
    out = jax.block_until_ready(out)

    ref = reference(x, params)
    assert out.shape == (B, T, D)
    # Tolerance accounts for the EUP approximate reciprocal in the softmax normalization.
    assert jnp.allclose(out, ref, atol=2e-3, rtol=2e-3), (
        f"mismatch: max abs err {jnp.max(jnp.abs(out - ref))}")

    print("KERNEL_OK")
</pallas_src>

<mosaic_0001>
module attributes {stable_mosaic.version = 11 : i64} {
  func.func @attention_block_kernel(%arg0: i32, %arg1: memref<8x8x32xf32, #tpu.memory_space<vmem>>, %arg2: memref<33x96xf32, #tpu.memory_space<vmem>>, %arg3: memref<33x32xf32, #tpu.memory_space<vmem>>, %arg4: memref<2x32xf32, #tpu.memory_space<vmem>>, %arg5: memref<8x256xf32, #tpu.memory_space<vmem>>, %arg6: memref<64x32xf32, #tpu.memory_space<vmem>>) attributes {dimension_semantics = [#tpu.dimension_semantics<parallel>], iteration_bounds = array<i64: 1>, scalar_prefetch = 0 : i64, scratch_operands = 1 : i64, tpu.core_type = #tpu.core_type<tc>, window_params = [{transform_indices = @transform_0, window_bounds = array<i64: 8, 8, 32>}, {pipeline_mode = #tpu.pipeline_mode<synchronous>, transform_indices = @transform_1, window_bounds = array<i64: 33, 96>}, {pipeline_mode = #tpu.pipeline_mode<synchronous>, transform_indices = @transform_2, window_bounds = array<i64: 33, 32>}, {pipeline_mode = #tpu.pipeline_mode<synchronous>, transform_indices = @transform_3, window_bounds = array<i64: 2, 32>}, {transform_indices = @transform_4, window_bounds = array<i64: 8, 256>}]} {
    %c0 = arith.constant 0 : index
    %c0_0 = arith.constant 0 : index
    %c0_1 = arith.constant 0 : index
    %0 = vector.load %arg1[%c0, %c0_0, %c0_1] : memref<8x8x32xf32, #tpu.memory_space<vmem>>, vector<8x8x32xf32>
    %1 = vector.shape_cast %0 : vector<8x8x32xf32> to vector<64x32xf32>
    %c0_2 = arith.constant 0 : index
    %c0_3 = arith.constant 0 : index
    %2 = vector.load %arg2[%c0_2, %c0_3] : memref<33x96xf32, #tpu.memory_space<vmem>>, vector<32x96xf32>
    %c32 = arith.constant 32 : index
    %c0_4 = arith.constant 0 : index
    %3 = vector.load %arg2[%c32, %c0_4] : memref<33x96xf32, #tpu.memory_space<vmem>>, vector<1x96xf32>
    %cst = arith.constant dense<0.000000e+00> : vector<64x96xf32>
    %4 = tpu.matmul %1, %2, %cst {dimension_numbers = #tpu.dot_dimension_numbers<[1], [0], [0], [1], [0, 0, 1, 1], [], []>} : vector<64x32xf32>, vector<32x96xf32>, vector<64x96xf32> -> vector<64x96xf32>
    %5 = vector.broadcast %3 : vector<1x96xf32> to vector<64x96xf32>
    %6 = arith.addf %4, %5 : vector<64x96xf32>
    %7 = vector.extract_strided_slice %6 {offsets = [0, 0], sizes = [64, 8], strides = [1, 1]} : vector<64x96xf32> to vector<64x8xf32>
    %8 = vector.shape_cast %7 : vector<64x8xf32> to vector<8x8x8xf32>
    %9 = vector.extract_strided_slice %6 {offsets = [0, 32], sizes = [64, 8], strides = [1, 1]} : vector<64x96xf32> to vector<64x8xf32>
    %10 = vector.shape_cast %9 : vector<64x8xf32> to vector<8x8x8xf32>
    %11 = vector.extract_strided_slice %6 {offsets = [0, 64], sizes = [64, 8], strides = [1, 1]} : vector<64x96xf32> to vector<64x8xf32>
    %12 = vector.shape_cast %11 : vector<64x8xf32> to vector<8x8x8xf32>
    "tpu.trace_start"() <{level = 10 : i32, message = "bqd,bkd->bqk"}> : () -> ()
    %cst_5 = arith.constant dense<0.000000e+00> : vector<8x8x8xf32>
    %13 = tpu.matmul %8, %10, %cst_5 {dimension_numbers = #tpu.dot_dimension_numbers<[2], [2], [1], [1], [0, 0, 0, 1, 1, 1], [0], [0]>} : vector<8x8x8xf32>, vector<8x8x8xf32>, vector<8x8x8xf32> -> vector<8x8x8xf32>
    "tpu.trace_stop"() : () -> ()
    %cst_6 = arith.constant dense<0xFF800000> : vector<8x8xf32>
    %14 = vector.multi_reduction <maximumf>, %13, %cst_6 [2] : vector<8x8x8xf32> to vector<8x8xf32>
    %15 = vector.shape_cast %14 : vector<8x8xf32> to vector<8x8x1xf32>
    %16 = vector.broadcast %15 : vector<8x8x1xf32> to vector<8x8x8xf32>
    %17 = arith.subf %13, %16 : vector<8x8x8xf32>
    %18 = math.exp %17 : vector<8x8x8xf32>
    %cst_7 = arith.constant dense<0.000000e+00> : vector<8x8xf32>
    %19 = vector.multi_reduction <add>, %18, %cst_7 [2] : vector<8x8x8xf32> to vector<8x8xf32>
    %20 = vector.shape_cast %19 : vector<8x8xf32> to vector<8x8x1xf32>
    %21 = tpu.reciprocal %20 {approx = true} : vector<8x8x1xf32> -> vector<8x8x1xf32>
    %22 = vector.broadcast %21 : vector<8x8x1xf32> to vector<8x8x8xf32>
    %23 = arith.mulf %18, %22 : vector<8x8x8xf32>
    "tpu.trace_start"() <{level = 10 : i32, message = "bqk,bkd->bqd"}> : () -> ()
    %cst_8 = arith.constant dense<0.000000e+00> : vector<8x8x8xf32>
    %24 = tpu.matmul %23, %12, %cst_8 {dimension_numbers = #tpu.dot_dimension_numbers<[2], [1], [1], [2], [0, 0, 0, 1, 1, 2], [0], [0]>} : vector<8x8x8xf32>, vector<8x8x8xf32>, vector<8x8x8xf32> -> vector<8x8x8xf32>
    "tpu.trace_stop"() : () -> ()
    %25 = vector.shape_cast %24 : vector<8x8x8xf32> to vector<64x8xf32>
    %c0_9 = arith.constant 0 : index
    %c0_10 = arith.constant 0 : index
    %26 = vector.load %arg6[%c0_9, %c0_10] : memref<64x32xf32, #tpu.memory_space<vmem>>, vector<64x8xf32>
    tpu.vector_store %arg6[%c0_9, %c0_10], %25 {strides = array<i32>} : memref<64x32xf32, #tpu.memory_space<vmem>>, vector<64x8xf32>,
    %27 = vector.extract_strided_slice %6 {offsets = [0, 8], sizes = [64, 8], strides = [1, 1]} : vector<64x96xf32> to vector<64x8xf32>
    %28 = vector.shape_cast %27 : vector<64x8xf32> to vector<8x8x8xf32>
    %29 = vector.extract_strided_slice %6 {offsets = [0, 40], sizes = [64, 8], strides = [1, 1]} : vector<64x96xf32> to vector<64x8xf32>
    %30 = vector.shape_cast %29 : vector<64x8xf32> to vector<8x8x8xf32>
    %31 = vector.extract_strided_slice %6 {offsets = [0, 72], sizes = [64, 8], strides = [1, 1]} : vector<64x96xf32> to vector<64x8xf32>
    %32 = vector.shape_cast %31 : vector<64x8xf32> to vector<8x8x8xf32>
    "tpu.trace_start"() <{level = 10 : i32, message = "bqd,bkd->bqk"}> : () -> ()
    %cst_11 = arith.constant dense<0.000000e+00> : vector<8x8x8xf32>
    %33 = tpu.matmul %28, %30, %cst_11 {dimension_numbers = #tpu.dot_dimension_numbers<[2], [2], [1], [1], [0, 0, 0, 1, 1, 1], [0], [0]>} : vector<8x8x8xf32>, vector<8x8x8xf32>, vector<8x8x8xf32> -> vector<8x8x8xf32>
    "tpu.trace_stop"() : () -> ()
    %cst_12 = arith.constant dense<0xFF800000> : vector<8x8xf32>
    %34 = vector.multi_reduction <maximumf>, %33, %cst_12 [2] : vector<8x8x8xf32> to vector<8x8xf32>
    %35 = vector.shape_cast %34 : vector<8x8xf32> to vector<8x8x1xf32>
    %36 = vector.broadcast %35 : vector<8x8x1xf32> to vector<8x8x8xf32>
    %37 = arith.subf %33, %36 : vector<8x8x8xf32>
    %38 = math.exp %37 : vector<8x8x8xf32>
    %cst_13 = arith.constant dense<0.000000e+00> : vector<8x8xf32>
    %39 = vector.multi_reduction <add>, %38, %cst_13 [2] : vector<8x8x8xf32> to vector<8x8xf32>
    %40 = vector.shape_cast %39 : vector<8x8xf32> to vector<8x8x1xf32>
    %41 = tpu.reciprocal %40 {approx = true} : vector<8x8x1xf32> -> vector<8x8x1xf32>
    %42 = vector.broadcast %41 : vector<8x8x1xf32> to vector<8x8x8xf32>
    %43 = arith.mulf %38, %42 : vector<8x8x8xf32>
    "tpu.trace_start"() <{level = 10 : i32, message = "bqk,bkd->bqd"}> : () -> ()
    %cst_14 = arith.constant dense<0.000000e+00> : vector<8x8x8xf32>
    %44 = tpu.matmul %43, %32, %cst_14 {dimension_numbers = #tpu.dot_dimension_numbers<[2], [1], [1], [2], [0, 0, 0, 1, 1, 2], [0], [0]>} : vector<8x8x8xf32>, vector<8x8x8xf32>, vector<8x8x8xf32> -> vector<8x8x8xf32>
    "tpu.trace_stop"() : () -> ()
    %45 = vector.shape_cast %44 : vector<8x8x8xf32> to vector<64x8xf32>
    %c0_15 = arith.constant 0 : index
    %c8 = arith.constant 8 : index
    %46 = vector.load %arg6[%c0_15, %c8] : memref<64x32xf32, #tpu.memory_space<vmem>>, vector<64x8xf32>
    tpu.vector_store %arg6[%c0_15, %c8], %45 {strides = array<i32>} : memref<64x32xf32, #tpu.memory_space<vmem>>, vector<64x8xf32>,
    %47 = vector.extract_strided_slice %6 {offsets = [0, 16], sizes = [64, 8], strides = [1, 1]} : vector<64x96xf32> to vector<64x8xf32>
    %48 = vector.shape_cast %47 : vector<64x8xf32> to vector<8x8x8xf32>
    %49 = vector.extract_strided_slice %6 {offsets = [0, 48], sizes = [64, 8], strides = [1, 1]} : vector<64x96xf32> to vector<64x8xf32>
    %50 = vector.shape_cast %49 : vector<64x8xf32> to vector<8x8x8xf32>
    %51 = vector.extract_strided_slice %6 {offsets = [0, 80], sizes = [64, 8], strides = [1, 1]} : vector<64x96xf32> to vector<64x8xf32>
    %52 = vector.shape_cast %51 : vector<64x8xf32> to vector<8x8x8xf32>
    "tpu.trace_start"() <{level = 10 : i32, message = "bqd,bkd->bqk"}> : () -> ()
    %cst_16 = arith.constant dense<0.000000e+00> : vector<8x8x8xf32>
    %53 = tpu.matmul %48, %50, %cst_16 {dimension_numbers = #tpu.dot_dimension_numbers<[2], [2], [1], [1], [0, 0, 0, 1, 1, 1], [0], [0]>} : vector<8x8x8xf32>, vector<8x8x8xf32>, vector<8x8x8xf32> -> vector<8x8x8xf32>
    "tpu.trace_stop"() : () -> ()
    %cst_17 = arith.constant dense<0xFF800000> : vector<8x8xf32>
    %54 = vector.multi_reduction <maximumf>, %53, %cst_17 [2] : vector<8x8x8xf32> to vector<8x8xf32>
    %55 = vector.shape_cast %54 : vector<8x8xf32> to vector<8x8x1xf32>
    %56 = vector.broadcast %55 : vector<8x8x1xf32> to vector<8x8x8xf32>
    %57 = arith.subf %53, %56 : vector<8x8x8xf32>
    %58 = math.exp %57 : vector<8x8x8xf32>
    %cst_18 = arith.constant dense<0.000000e+00> : vector<8x8xf32>
    %59 = vector.multi_reduction <add>, %58, %cst_18 [2] : vector<8x8x8xf32> to vector<8x8xf32>
    %60 = vector.shape_cast %59 : vector<8x8xf32> to vector<8x8x1xf32>
    %61 = tpu.reciprocal %60 {approx = true} : vector<8x8x1xf32> -> vector<8x8x1xf32>
    %62 = vector.broadcast %61 : vector<8x8x1xf32> to vector<8x8x8xf32>
    %63 = arith.mulf %58, %62 : vector<8x8x8xf32>
    "tpu.trace_start"() <{level = 10 : i32, message = "bqk,bkd->bqd"}> : () -> ()
    %cst_19 = arith.constant dense<0.000000e+00> : vector<8x8x8xf32>
    %64 = tpu.matmul %63, %52, %cst_19 {dimension_numbers = #tpu.dot_dimension_numbers<[2], [1], [1], [2], [0, 0, 0, 1, 1, 2], [0], [0]>} : vector<8x8x8xf32>, vector<8x8x8xf32>, vector<8x8x8xf32> -> vector<8x8x8xf32>
    "tpu.trace_stop"() : () -> ()
    %65 = vector.shape_cast %64 : vector<8x8x8xf32> to vector<64x8xf32>
    %c0_20 = arith.constant 0 : index
    %c16 = arith.constant 16 : index
    %66 = vector.load %arg6[%c0_20, %c16] : memref<64x32xf32, #tpu.memory_space<vmem>>, vector<64x8xf32>
    tpu.vector_store %arg6[%c0_20, %c16], %65 {strides = array<i32>} : memref<64x32xf32, #tpu.memory_space<vmem>>, vector<64x8xf32>,
    %67 = vector.extract_strided_slice %6 {offsets = [0, 24], sizes = [64, 8], strides = [1, 1]} : vector<64x96xf32> to vector<64x8xf32>
    %68 = vector.shape_cast %67 : vector<64x8xf32> to vector<8x8x8xf32>
    %69 = vector.extract_strided_slice %6 {offsets = [0, 56], sizes = [64, 8], strides = [1, 1]} : vector<64x96xf32> to vector<64x8xf32>
    %70 = vector.shape_cast %69 : vector<64x8xf32> to vector<8x8x8xf32>
    %71 = vector.extract_strided_slice %6 {offsets = [0, 88], sizes = [64, 8], strides = [1, 1]} : vector<64x96xf32> to vector<64x8xf32>
    %72 = vector.shape_cast %71 : vector<64x8xf32> to vector<8x8x8xf32>
    "tpu.trace_start"() <{level = 10 : i32, message = "bqd,bkd->bqk"}> : () -> ()
    %cst_21 = arith.constant dense<0.000000e+00> : vector<8x8x8xf32>
    %73 = tpu.matmul %68, %70, %cst_21 {dimension_numbers = #tpu.dot_dimension_numbers<[2], [2], [1], [1], [0, 0, 0, 1, 1, 1], [0], [0]>} : vector<8x8x8xf32>, vector<8x8x8xf32>, vector<8x8x8xf32> -> vector<8x8x8xf32>
    "tpu.trace_stop"() : () -> ()
    %cst_22 = arith.constant dense<0xFF800000> : vector<8x8xf32>
    %74 = vector.multi_reduction <maximumf>, %73, %cst_22 [2] : vector<8x8x8xf32> to vector<8x8xf32>
    %75 = vector.shape_cast %74 : vector<8x8xf32> to vector<8x8x1xf32>
    %76 = vector.broadcast %75 : vector<8x8x1xf32> to vector<8x8x8xf32>
    %77 = arith.subf %73, %76 : vector<8x8x8xf32>
    %78 = math.exp %77 : vector<8x8x8xf32>
    %cst_23 = arith.constant dense<0.000000e+00> : vector<8x8xf32>
    %79 = vector.multi_reduction <add>, %78, %cst_23 [2] : vector<8x8x8xf32> to vector<8x8xf32>
    %80 = vector.shape_cast %79 : vector<8x8xf32> to vector<8x8x1xf32>
    %81 = tpu.reciprocal %80 {approx = true} : vector<8x8x1xf32> -> vector<8x8x1xf32>
    %82 = vector.broadcast %81 : vector<8x8x1xf32> to vector<8x8x8xf32>
    %83 = arith.mulf %78, %82 : vector<8x8x8xf32>
    "tpu.trace_start"() <{level = 10 : i32, message = "bqk,bkd->bqd"}> : () -> ()
    %cst_24 = arith.constant dense<0.000000e+00> : vector<8x8x8xf32>
    %84 = tpu.matmul %83, %72, %cst_24 {dimension_numbers = #tpu.dot_dimension_numbers<[2], [1], [1], [2], [0, 0, 0, 1, 1, 2], [0], [0]>} : vector<8x8x8xf32>, vector<8x8x8xf32>, vector<8x8x8xf32> -> vector<8x8x8xf32>
    "tpu.trace_stop"() : () -> ()
    %85 = vector.shape_cast %84 : vector<8x8x8xf32> to vector<64x8xf32>
    %c0_25 = arith.constant 0 : index
    %c24 = arith.constant 24 : index
    %86 = vector.load %arg6[%c0_25, %c24] : memref<64x32xf32, #tpu.memory_space<vmem>>, vector<64x8xf32>
    tpu.vector_store %arg6[%c0_25, %c24], %85 {strides = array<i32>} : memref<64x32xf32, #tpu.memory_space<vmem>>, vector<64x8xf32>,
    %c0_26 = arith.constant 0 : index
    %c0_27 = arith.constant 0 : index
    %87 = vector.load %arg6[%c0_26, %c0_27] : memref<64x32xf32, #tpu.memory_space<vmem>>, vector<64x32xf32>
    %c0_28 = arith.constant 0 : index
    %c0_29 = arith.constant 0 : index
    %88 = vector.load %arg3[%c0_28, %c0_29] : memref<33x32xf32, #tpu.memory_space<vmem>>, vector<32x32xf32>
    %cst_30 = arith.constant dense<0.000000e+00> : vector<64x32xf32>
    %89 = tpu.matmul %87, %88, %cst_30 {dimension_numbers = #tpu.dot_dimension_numbers<[1], [0], [0], [1], [0, 0, 1, 1], [], []>} : vector<64x32xf32>, vector<32x32xf32>, vector<64x32xf32> -> vector<64x32xf32>
    %c32_31 = arith.constant 32 : index
    %c0_32 = arith.constant 0 : index
    %90 = vector.load %arg3[%c32_31, %c0_32] : memref<33x32xf32, #tpu.memory_space<vmem>>, vector<1x32xf32>
    %91 = vector.broadcast %90 : vector<1x32xf32> to vector<64x32xf32>
    %92 = arith.addf %89, %91 : vector<64x32xf32>
    %93 = arith.addf %1, %92 : vector<64x32xf32>
    %cst_33 = arith.constant dense<0.000000e+00> : vector<64xf32>
    %94 = vector.multi_reduction <add>, %93, %cst_33 [1] : vector<64x32xf32> to vector<64xf32>
    %95 = vector.shape_cast %94 : vector<64xf32> to vector<64x1xf32>
    %cst_34 = arith.constant 3.200000e+01 : f32
    %96 = vector.broadcast %cst_34 : f32 to vector<64x1xf32>
    %97 = arith.divf %95, %96 : vector<64x1xf32>
    %98 = vector.broadcast %97 : vector<64x1xf32> to vector<64x32xf32>
    %99 = arith.subf %93, %98 : vector<64x32xf32>
    %100 = arith.mulf %99, %99 : vector<64x32xf32>
    %cst_35 = arith.constant dense<0.000000e+00> : vector<64xf32>
    %101 = vector.multi_reduction <add>, %100, %cst_35 [1] : vector<64x32xf32> to vector<64xf32>
    %102 = vector.shape_cast %101 : vector<64xf32> to vector<64x1xf32>
    %cst_36 = arith.constant 3.200000e+01 : f32
    %103 = vector.broadcast %cst_36 : f32 to vector<64x1xf32>
    %104 = arith.divf %102, %103 : vector<64x1xf32>
    %105 = vector.broadcast %97 : vector<64x1xf32> to vector<64x32xf32>
    %106 = arith.subf %93, %105 : vector<64x32xf32>
    %cst_37 = arith.constant 9.99999974E-6 : f32
    %107 = vector.broadcast %cst_37 : f32 to vector<64x1xf32>
    %108 = arith.addf %104, %107 : vector<64x1xf32>
    %109 = math.rsqrt %108 : vector<64x1xf32>
    %110 = vector.broadcast %109 : vector<64x1xf32> to vector<64x32xf32>
    %111 = arith.mulf %106, %110 : vector<64x32xf32>
    %c0_38 = arith.constant 0 : index
    %c0_39 = arith.constant 0 : index
    %112 = vector.load %arg4[%c0_38, %c0_39] : memref<2x32xf32, #tpu.memory_space<vmem>>, vector<1x32xf32>
    %113 = vector.broadcast %112 : vector<1x32xf32> to vector<64x32xf32>
    %114 = arith.mulf %111, %113 : vector<64x32xf32>
    %c1 = arith.constant 1 : index
    %c0_40 = arith.constant 0 : index
    %115 = vector.load %arg4[%c1, %c0_40] : memref<2x32xf32, #tpu.memory_space<vmem>>, vector<1x32xf32>
    %116 = vector.broadcast %115 : vector<1x32xf32> to vector<64x32xf32>
    %117 = arith.addf %114, %116 : vector<64x32xf32>
    %118 = vector.shape_cast %117 : vector<64x32xf32> to vector<8x8x32xf32>
    %119 = vector.extract_strided_slice %118 {offsets = [0, 0, 0], sizes = [8, 1, 32], strides = [1, 1, 1]} : vector<8x8x32xf32> to vector<8x1x32xf32>
    %120 = vector.shape_cast %119 : vector<8x1x32xf32> to vector<8x32xf32>
    %c0_41 = arith.constant 0 : index
    %c0_42 = arith.constant 0 : index
    %121 = vector.load %arg5[%c0_41, %c0_42] : memref<8x256xf32, #tpu.memory_space<vmem>>, vector<8x32xf32>
    tpu.vector_store %arg5[%c0_41, %c0_42], %120 {strides = array<i32>} : memref<8x256xf32, #tpu.memory_space<vmem>>, vector<8x32xf32>,
    %122 = vector.extract_strided_slice %118 {offsets = [0, 1, 0], sizes = [8, 1, 32], strides = [1, 1, 1]} : vector<8x8x32xf32> to vector<8x1x32xf32>
    %123 = vector.shape_cast %122 : vector<8x1x32xf32> to vector<8x32xf32>
    %c0_43 = arith.constant 0 : index
    %c32_44 = arith.constant 32 : index
    %124 = vector.load %arg5[%c0_43, %c32_44] : memref<8x256xf32, #tpu.memory_space<vmem>>, vector<8x32xf32>
    tpu.vector_store %arg5[%c0_43, %c32_44], %123 {strides = array<i32>} : memref<8x256xf32, #tpu.memory_space<vmem>>, vector<8x32xf32>,
    %125 = vector.extract_strided_slice %118 {offsets = [0, 2, 0], sizes = [8, 1, 32], strides = [1, 1, 1]} : vector<8x8x32xf32> to vector<8x1x32xf32>
    %126 = vector.shape_cast %125 : vector<8x1x32xf32> to vector<8x32xf32>
    %c0_45 = arith.constant 0 : index
    %c64 = arith.constant 64 : index
    %127 = vector.load %arg5[%c0_45, %c64] : memref<8x256xf32, #tpu.memory_space<vmem>>, vector<8x32xf32>
    tpu.vector_store %arg5[%c0_45, %c64], %126 {strides = array<i32>} : memref<8x256xf32, #tpu.memory_space<vmem>>, vector<8x32xf32>,
    %128 = vector.extract_strided_slice %118 {offsets = [0, 3, 0], sizes = [8, 1, 32], strides = [1, 1, 1]} : vector<8x8x32xf32> to vector<8x1x32xf32>
    %129 = vector.shape_cast %128 : vector<8x1x32xf32> to vector<8x32xf32>
    %c0_46 = arith.constant 0 : index
    %c96 = arith.constant 96 : index
    %130 = vector.load %arg5[%c0_46, %c96] : memref<8x256xf32, #tpu.memory_space<vmem>>, vector<8x32xf32>
    tpu.vector_store %arg5[%c0_46, %c96], %129 {strides = array<i32>} : memref<8x256xf32, #tpu.memory_space<vmem>>, vector<8x32xf32>,
    %131 = vector.extract_strided_slice %118 {offsets = [0, 4, 0], sizes = [8, 1, 32], strides = [1, 1, 1]} : vector<8x8x32xf32> to vector<8x1x32xf32>
    %132 = vector.shape_cast %131 : vector<8x1x32xf32> to vector<8x32xf32>
    %c0_47 = arith.constant 0 : index
    %c128 = arith.constant 128 : index
    %133 = vector.load %arg5[%c0_47, %c128] : memref<8x256xf32, #tpu.memory_space<vmem>>, vector<8x32xf32>
    tpu.vector_store %arg5[%c0_47, %c128], %132 {strides = array<i32>} : memref<8x256xf32, #tpu.memory_space<vmem>>, vector<8x32xf32>,
    %134 = vector.extract_strided_slice %118 {offsets = [0, 5, 0], sizes = [8, 1, 32], strides = [1, 1, 1]} : vector<8x8x32xf32> to vector<8x1x32xf32>
    %135 = vector.shape_cast %134 : vector<8x1x32xf32> to vector<8x32xf32>
    %c0_48 = arith.constant 0 : index
    %c160 = arith.constant 160 : index
    %136 = vector.load %arg5[%c0_48, %c160] : memref<8x256xf32, #tpu.memory_space<vmem>>, vector<8x32xf32>
    tpu.vector_store %arg5[%c0_48, %c160], %135 {strides = array<i32>} : memref<8x256xf32, #tpu.memory_space<vmem>>, vector<8x32xf32>,
    %137 = vector.extract_strided_slice %118 {offsets = [0, 6, 0], sizes = [8, 1, 32], strides = [1, 1, 1]} : vector<8x8x32xf32> to vector<8x1x32xf32>
    %138 = vector.shape_cast %137 : vector<8x1x32xf32> to vector<8x32xf32>
    %c0_49 = arith.constant 0 : index
    %c192 = arith.constant 192 : index
    %139 = vector.load %arg5[%c0_49, %c192] : memref<8x256xf32, #tpu.memory_space<vmem>>, vector<8x32xf32>
    tpu.vector_store %arg5[%c0_49, %c192], %138 {strides = array<i32>} : memref<8x256xf32, #tpu.memory_space<vmem>>, vector<8x32xf32>,
    %140 = vector.extract_strided_slice %118 {offsets = [0, 7, 0], sizes = [8, 1, 32], strides = [1, 1, 1]} : vector<8x8x32xf32> to vector<8x1x32xf32>
    %141 = vector.shape_cast %140 : vector<8x1x32xf32> to vector<8x32xf32>
    %c0_50 = arith.constant 0 : index
    %c224 = arith.constant 224 : index
    %142 = vector.load %arg5[%c0_50, %c224] : memref<8x256xf32, #tpu.memory_space<vmem>>, vector<8x32xf32>
    tpu.vector_store %arg5[%c0_50, %c224], %141 {strides = array<i32>} : memref<8x256xf32, #tpu.memory_space<vmem>>, vector<8x32xf32>,
    return
  }
  func.func @transform_0(%arg0: i32) -> (i32, i32, i32) {
    %c0_i32 = arith.constant 0 : i32
    %c0_i32_0 = arith.constant 0 : i32
    %c0_i32_1 = arith.constant 0 : i32
    return %arg0, %c0_i32, %c0_i32_0 : i32, i32, i32
  }
  func.func @transform_1(%arg0: i32) -> (i32, i32) {
    %c0_i32 = arith.constant 0 : i32
    %c0_i32_0 = arith.constant 0 : i32
    %c0_i32_1 = arith.constant 0 : i32
    return %c0_i32, %c0_i32_0 : i32, i32
  }
  func.func @transform_2(%arg0: i32) -> (i32, i32) {
    %c0_i32 = arith.constant 0 : i32
    %c0_i32_0 = arith.constant 0 : i32
    %c0_i32_1 = arith.constant 0 : i32
    return %c0_i32, %c0_i32_0 : i32, i32
  }
  func.func @transform_3(%arg0: i32) -> (i32, i32) {
    %c0_i32 = arith.constant 0 : i32
    %c0_i32_0 = arith.constant 0 : i32
    %c0_i32_1 = arith.constant 0 : i32
    return %c0_i32, %c0_i32_0 : i32, i32
  }
  func.func @transform_4(%arg0: i32) -> (i32, i32) {
    %c0_i32 = arith.constant 0 : i32
    %c0_i32_0 = arith.constant 0 : i32
    return %arg0, %c0_i32 : i32, i32
  }
}

</mosaic_0001>

<bundles_post_ra>
// kernel: attention_blocks.1
= control target key start
LH: loop header
LB: loop body
LE: loop exit
PB: predicated region body
PF: predicated region fallthrough
CT: control target
= control target key end

     0   :  { %vm34_vm0 = vcmask 261120   ;;  %v6828_v14 = vmov 0.0   ;;  %vm6829_vm1 = vmmov 0   ;;  %s6830_s15 = smov 96   ;;  %vm167_vm2 = vcmask 64512   ;;  %s6832_s16 = smov 88   ;;  %s8082_s1 = inlined_call_operand.vmem [shape: f32[33,96], index: 1, kind: input, shape index: {}]   ;;  %s8083_s0 = inlined_call_operand.vmem [shape: f32[8,8,32], index: 0, kind: input, shape index: {}]   ;;  %s8084_s2 = inlined_call_operand.vmem [shape: f32[33,32], index: 2, kind: input, shape index: {}]   ;;  %s8085_s3 = inlined_call_operand.vmem [shape: f32[2,32], index: 3, kind: input, shape index: {}]   ;;  %s8086_s4 = inlined_call_operand.vmem [shape: f32[8,256], index: 4, kind: output, shape index: {}]  }
   0x1   :  { %v25_v0 = vld [vmem:[%s8082_s1] sm:$0xff]  ;;  %v26_v1 = vld [vmem:[%s8082_s1 + $0x8] sm:$0xff]  ;;  %v27_v3 = vld [vmem:[%s8082_s1 + $0x10] sm:$0xff]  ;;  %6313 = vmatprep.subr.mxu1 %v6828_v14  ;;  %6315 = vmatprep.mubr.msk.f32.mxu1 %vm6829_vm1, %v6828_v14  ;;  %s6833_s17 = smov 120   ;;  %s6834_s18 = smov 56   ;;  %vm2837_vm3 = vcmask 130112  }
   0x2   :  { %v6643_v2 = vpack.c.bf16 %v26_v1, %v25_v0  ;;  %v28_v4 = vld [vmem:[%s8082_s1 + $0x18] sm:$0xff]  ;;  %v17_v5 = vld [vmem:[%s8083_s0] sm:$0xff]  ;;  %v18_v7 = vld [vmem:[%s8083_s0 + $0x8] sm:$0xff]  ;;  %s6835_s19 = smov 80   ;;  %s6836_s20 = smov 112   ;;  %vm4198_vm4 = vcmask 195712  }
   0x3   :  { %v6647_v6 = vpack.c.bf16 %v28_v4, %v27_v3  ;;  %6291 = vmatprep.mubr.msk.f32.mxu0 %vm34_vm0, %v17_v5  ;;  %v19_v8 = vld [vmem:[%s8083_s0 + $0x10] sm:$0xff]  ;;  %v20_v9 = vld [vmem:[%s8083_s0 + $0x18] sm:$0xff]  ;;  %v21_v10 = vld [vmem:[%s8083_s0 + $0x20] sm:$0xff]  ;;  %s6837_s21 = smov 48   ;;  %s6838_s22 = smov 72   ;;  %vm5559_vm5 = vcmask 261312  }
   0x4   :  { %6644 = vmatprep.subr.bf16.mxu0 %v6643_v2  ;;  %v22_v11 = vld [vmem:[%s8083_s0 + $0x28] sm:$0xff]  ;;  %v23_v12 = vld [vmem:[%s8083_s0 + $0x30] sm:$0xff]  ;;  %v24_v13 = vld [vmem:[%s8083_s0 + $0x38] sm:$0xff]  ;;  %s6839_s23 = smov 104   ;;  %s6840_s24 = smov 40   ;;  %vm5862_vm6 = vcmask 1041409  }
   0x5   :  { %6646 = vmatpush3.bf16.msra.mxu0 %v6643_v2  ;;  %v6015_v15 = vld [vmem:[%s8082_s1 + $0x20] ss:$0 sm:$0xff]  ;;  %s6831_s1 = smov 64   ;;  %s6841_s25 = smov 8   ;;  %vm5865_vm7 = vcmask 1042434   ;;  %vm5868_vm8 = vcmask 1043459  }
   0x6   :  { %6648 = vmatprep.subr.bf16.mxu0 %v6647_v6  ;;  %s6842_s26 = smov 16   ;;  %s6843_s9 = smov 24   ;;  %vm5874_vm9 = vcmask 1045509   ;;  %vm5871_vm10 = vcmask 1044484   ;;  %vm5877_vm11 = vcmask 1046534   ;;  %vm5880_vm12 = vcmask 1047559  }
   0x7   :  { %vm5901_vm13 = vcmask 523520   ;;  %vm5920_vm14 = vcmask 785920   ;;  %vm5939_vm15 = vcmask 1048320  }
   0x9   :  { %6650 = vmatpush3.bf16.msra.mxu0 %v6647_v6 }
   0xa   :  { %6303 = vmatprep.subr.mxu0 %v6828_v14 }
   0xc   :  { %6292 = vmatmul.mubr.msk.f32.vlgmr.msra.gmra.mrb[0].mxu0 %vm34_vm0, %v18_v7 }
   0xd   :  { %6294 = vmatprep.mubr.msk.f32.mxu0 %vm34_vm0, %v19_v8 }
  0x10   :  { %6295 = vmatmul.mubr.msk.f32.gmra.mrb[2].mxu0 %vm34_vm0, %v20_v9 }
  0x11   :  { %6297 = vmatprep.mubr.msk.f32.mxu0 %vm34_vm0, %v21_v10 }
  0x14   :  { %6298 = vmatmul.mubr.msk.f32.gmra.mrb[4].mxu0 %vm34_vm0, %v22_v11 }
  0x15   :  { %6300 = vmatprep.mubr.msk.f32.mxu0 %vm34_vm0, %v23_v12 }
  0x18   :  { %6301 = vmatmul.mubr.msk.f32.gmra.mrb[6].mxu0 %vm34_vm0, %v24_v13 }
  0x19   :  { %6305 = vmatprep.mubr.msk.f32.mxu0 %vm6829_vm1, %v6828_v14 }
  0xdf   :  { %v6293_v16 = vpop.f32.mrb[0].mxu0 }
  0xe0   :  { %v6923_v17 = vadd.f32 %v6293_v16, %v6015_v15  ;;  %v125_v18 = vpop.f32.mrb[1].mxu0 }
  0xe1   :  { %v6925_v19 = vadd.f32 %v6015_v15, %v125_v18 }
  0xe2   :  { %243 = vrot.lane.b32.xlu1 %v6923_v17, %s6830_s15 }
  0xe3   :  { %v6296_v20 = vpop.f32.mrb[2].mxu0  ;;  %165 = vrot.lane.b32.xlu0 %v6925_v19, %s6830_s15 }
  0xe4   :  { %v6931_v21 = vadd.f32 %v6296_v20, %v6015_v15  ;;  %v135_v22 = vpop.f32.mrb[3].mxu0 }
  0xe5   :  { %v6933_v23 = vadd.f32 %v6015_v15, %v135_v22 }
  0xe6   :  { %397 = vrot.lane.b32.xlu1 %v6931_v21, %s6830_s15 }
  0xe7   :  { %320 = vrot.lane.b32.xlu0 %v6933_v23, %s6830_s15  ;;  %v6299_v24 = vpop.f32.mrb[4].mxu0 }
  0xe8   :  { %v6939_v25 = vadd.f32 %v6299_v24, %v6015_v15  ;;  %v145_v26 = vpop.f32.mrb[5].mxu0 }
  0xe9   :  { %v6941_v27 = vadd.f32 %v6015_v15, %v145_v26 }
  0xea   :  { %551 = vrot.lane.b32.xlu1 %v6939_v25, %s6830_s15 }
  0xeb   :  { %474 = vrot.lane.b32.xlu0 %v6941_v27, %s6830_s15  ;;  %v6302_v28 = vpop.f32.mrb[6].mxu0 }
  0xec   :  { %v6947_v29 = vadd.f32 %v6302_v28, %v6015_v15  ;;  %v155_v30 = vpop.f32.mrb[7].mxu0 }
  0xed   :  { %v6949_v31 = vadd.f32 %v6015_v15, %v155_v30 }
  0xee   :  { %705 = vrot.lane.b32.xlu1 %v6947_v29, %s6830_s15 }
  0xef   :  { %628 = vrot.lane.b32.xlu0 %v6949_v31, %s6830_s15 }
 0x154   :  { %v244_v32 = vpop.permute.xlu1 %243 }
 0x155   :  { %v166_v33 = vpop.permute.xlu0 %165 }
 0x156   :  { %6304 = vmatpush3.xpose.msk.msra.mxu0 %vm167_vm2, %v166_v33 }
 0x157   :  { %6308 = vmatprep.subr.mxu0 %v6828_v14 }
 0x158   :  { %v398_v34 = vpop.permute.xlu1 %397 }
 0x159   :  { %6306 = vmatmul.mubr.msk.f32.vlgmr.msra.gmra.mrb[8].mxu0 %vm167_vm2, %v6925_v19  ;;  %v321_v35 = vpop.permute.xlu0 %320 }
 0x15a   :  { %6309 = vmatpush3.xpose.msk.msra.mxu0 %vm167_vm2, %v244_v32  ;;  %6314 = vmatpush3.xpose.msk.msra.mxu1 %vm167_vm2, %v321_v35 }
 0x15b   :  { %6310 = vmatprep.mubr.msk.f32.mxu0 %vm6829_vm1, %v6828_v14  ;;  %6318 = vmatprep.subr.mxu1 %v6828_v14 }
 0x15c   :  { %v552_v36 = vpop.permute.xlu1 %551  ;;  %6328 = vmatprep.subr.mxu0 %v6828_v14 }
 0x15d   :  { %6311 = vmatmul.mubr.msk.f32.vlgmr.msra.gmra.mrb[10].mxu0 %vm167_vm2, %v6923_v17  ;;  %6316 = vmatmul.mubr.msk.f32.vlgmr.msra.gmra.mrb[0].mxu1 %vm167_vm2, %v6933_v23  ;;  %v475_v37 = vpop.permute.xlu0 %474 }
 0x15e   :  { %6319 = vmatpush3.xpose.msk.msra.mxu1 %vm167_vm2, %v398_v34  ;;  %6329 = vmatpush3.xpose.msk.msra.mxu0 %vm167_vm2, %v552_v36 }
 0x15f   :  { %6320 = vmatprep.mubr.msk.f32.mxu1 %vm6829_vm1, %v6828_v14  ;;  %6330 = vmatprep.mubr.msk.f32.mxu0 %vm6829_vm1, %v6828_v14 }
 0x160   :  { %6323 = vmatprep.subr.mxu1 %v6828_v14  ;;  %v706_v38 = vpop.permute.xlu1 %705  ;;  %6338 = vmatprep.subr.mxu0 %v6828_v14 }
 0x161   :  { %6321 = vmatmul.mubr.msk.f32.vlgmr.msra.gmra.mrb[2].mxu1 %vm167_vm2, %v6931_v21  ;;  %6331 = vmatmul.mubr.msk.f32.vlgmr.msra.gmra.mrb[12].mxu0 %vm167_vm2, %v6939_v25  ;;  %v629_v39 = vpop.permute.xlu0 %628 }
 0x162   :  { %6324 = vmatpush3.xpose.msk.msra.mxu1 %vm167_vm2, %v475_v37  ;;  %6325 = vmatprep.mubr.msk.f32.mxu1 %vm6829_vm1, %v6828_v14 }
 0x163   :  { %6339 = vmatpush3.xpose.msk.msra.mxu0 %vm167_vm2, %v706_v38  ;;  %6340 = vmatprep.mubr.msk.f32.mxu0 %vm6829_vm1, %v6828_v14 }
 0x164   :  { %6333 = vmatprep.subr.mxu1 %v6828_v14  ;;  %6348 = vmatprep.subr.mxu0 %v6828_v14 }
 0x165   :  { %6326 = vmatmul.mubr.msk.f32.vlgmr.msra.gmra.mrb[4].mxu1 %vm167_vm2, %v6941_v27 }
 0x166   :  { %6341 = vmatmul.mubr.msk.f32.vlgmr.msra.gmra.mrb[14].mxu0 %vm167_vm2, %v6947_v29  ;;  %6334 = vmatpush3.xpose.msk.msra.mxu1 %vm167_vm2, %v629_v39 }
 0x167   :  { %6335 = vmatprep.mubr.msk.f32.mxu1 %vm6829_vm1, %v6828_v14  ;;  %6343 = vmatprep.subr.mxu1 %v6828_v14 }
 0x168   :  { %6350 = vmatprep.mubr.msk.f32.mxu0 %vm6829_vm1, %v6828_v14 }
 0x169   :  { %6336 = vmatmul.mubr.msk.f32.vlgmr.msra.gmra.mrb[6].mxu1 %vm167_vm2, %v6949_v31 }
 0x16a   :  { %6345 = vmatprep.mubr.msk.f32.mxu1 %vm6829_vm1, %v6828_v14 }
 0x22c   :  { %v7003_v40 = vpop.f32.mrb[8].mxu0 }
 0x22d   :  { %v6307_v41 = vpop.f32.mrb[9].mxu0  ;;  %v781_v42 = vsel %vm167_vm2, %v7003_v40, -inf }
 0x22e   :  { %782 = vmax.xlane.f32.xlu0 %v781_v42 }
 0x230   :  { %v315_v43 = vpop.f32.mrb[10].mxu0  ;;  %v7007_v44 = vpop.f32.mrb[0].mxu1 }
 0x231   :  { %v6312_v45 = vpop.f32.mrb[11].mxu0  ;;  %v6317_v46 = vpop.f32.mrb[1].mxu1  ;;  %v784_v47 = vsel %vm167_vm2, %v315_v43, -inf  ;;  %v787_v48 = vsel %vm167_vm2, %v7007_v44, -inf }
 0x232   :  { %785 = vmax.xlane.f32.xlu1 %v784_v47  ;;  %788 = vmax.xlane.f32.xlu0 %v787_v48 }
 0x234   :  { %v469_v49 = vpop.f32.mrb[2].mxu1  ;;  %v623_v50 = vpop.f32.mrb[12].mxu0 }
 0x235   :  { %v6322_v51 = vpop.f32.mrb[3].mxu1  ;;  %v6332_v52 = vpop.f32.mrb[13].mxu0  ;;  %v790_v53 = vsel %vm167_vm2, %v469_v49, -inf  ;;  %v796_v56 = vsel %vm167_vm2, %v623_v50, -inf }
 0x236   :  { %791 = vmax.xlane.f32.xlu0 %v790_v53 }
 0x238   :  { %v7013_v54 = vpop.f32.mrb[4].mxu1 }
 0x239   :  { %v6327_v55 = vpop.f32.mrb[5].mxu1  ;;  %v777_v57 = vpop.f32.mrb[14].mxu0  ;;  %v793_v62 = vsel %vm167_vm2, %v7013_v54, -inf }
 0x23a   :  { %797 = vmax.xlane.f32.xlu0 %v796_v56  ;;  %v6342_v58 = vpop.f32.mrb[15].mxu0  ;;  %v802_v60 = vsel %vm167_vm2, %v777_v57, -inf }
 0x23c   :  { %v7016_v59 = vpop.f32.mrb[6].mxu1 }
 0x23d   :  { %v6337_v61 = vpop.f32.mrb[7].mxu1  ;;  %v799_v63 = vsel %vm167_vm2, %v7016_v59, -inf }
 0x23e   :  { %803 = vmax.xlane.f32.xlu0 %v802_v60 }
 0x243   :  { %869 = vrot.lane.b32.xlu1 %v6925_v19, %s6831_s1 }
 0x254   :  { %945 = vrot.lane.b32.xlu0 %v6923_v17, %s6831_s1 }
 0x258   :  { %1173 = vrot.lane.b32.xlu0 %v6941_v27, %s6831_s1 }
 0x25c   :  { %1325 = vrot.lane.b32.xlu0 %v6949_v31, %s6831_s1 }
 0x260   :  { %1487 = vrot.lane.b32.xlu0 %v6925_v19, %s6832_s16 }
 0x264   :  { %1485 = vrot.lane.b32.xlu0 %v6925_v19, %s6833_s17 }
 0x267   :  { %794 = vmax.xlane.f32.xlu1 %v793_v62 }
 0x268   :  { %1643 = vrot.lane.b32.xlu0 %v6933_v23, %s6832_s16 }
 0x278   :  { %1021 = vrot.lane.b32.xlu1 %v6933_v23, %s6831_s1 }
 0x27c   :  { %1097 = vrot.lane.b32.xlu1 %v6931_v21, %s6831_s1 }
 0x280   :  { %1249 = vrot.lane.b32.xlu1 %v6939_v25, %s6831_s1 }
 0x284   :  { %1401 = vrot.lane.b32.xlu1 %v6947_v29, %s6831_s1 }
 0x288   :  { %1565 = vrot.lane.b32.xlu1 %v6923_v17, %s6832_s16 }
 0x28c   :  { %1563 = vrot.lane.b32.xlu1 %v6923_v17, %s6833_s17 }
 0x2b0   :  { %800 = vmax.xlane.f32.xlu1 %v799_v63 }
 0x2bb   :  { %v783_v0 = vpop.xlane.xlu0 %782 }
 0x2bc   :  { %v805_v18 = vsub.f32 %v7003_v40, %v783_v0 }
 0x2be   :  { %v813_v26 = vmul.f32 1.442695, %v805_v18 }
 0x2bf   :  { %v786_v1 = vpop.xlane.xlu1 %785  ;;  %v789_v2 = vpop.xlane.xlu0 %788 }
 0x2c0   :  { %v806_v3 = vsub.f32 %v315_v43, %v786_v1  ;;  %v807_v28 = vsub.f32 %v7007_v44, %v789_v2 }
 0x2c1   :  { %1721 = vrot.lane.b32.xlu1 %v6931_v21, %s6832_s16 }
 0x2c2   :  { %v815_v4 = vmul.f32 1.442695, %v806_v3  ;;  %v817_v33 = vmul.f32 1.442695, %v807_v28 }
 0x2c3   :  { %v870_v5 = vpop.permute.xlu1 %869  ;;  %v792_v6 = vpop.xlane.xlu0 %791 }
 0x2c4   :  { %6676 = vpow2.f32 %v815_v4  ;;  %v808_v7 = vsub.f32 %v469_v49, %v792_v6  ;;  %6344 = vmatpush3.msra.mxu1 %v870_v5 }
 0x2c5   :  { %6353 = vmatprep.subr.mxu1 %v6828_v14 }
 0x2c6   :  { %v819_v8 = vmul.f32 1.442695, %v808_v7 }
 0x2c7   :  { %v798_v9 = vpop.xlane.xlu0 %797 }
 0x2c8   :  { %6678 = vpow2.f32 %v819_v8  ;;  %v810_v10 = vsub.f32 %v623_v50, %v798_v9 }
 0x2ca   :  { %v823_v11 = vmul.f32 1.442695, %v810_v10 }
 0x2cb   :  { %v804_v12 = vpop.xlane.xlu0 %803 }
 0x2cc   :  { %6680 = vpow2.f32 %v823_v11  ;;  %v812_v13 = vsub.f32 %v777_v57, %v804_v12 }
 0x2ce   :  { %v7052_v15 = vpop.eup %6676  ;;  %v827_v16 = vmul.f32 1.442695, %v812_v13 }
 0x2cf   :  { %v946_v20 = vpop.permute.xlu0 %945  ;;  %v832_v22 = vsel %vm167_vm2, %v7052_v15, 0.0 }
 0x2d0   :  { %6682 = vpow2.f32 %v827_v16  ;;  %833 = vadd.xlane.f32.xlu0 %v832_v22  ;;  %6349 = vmatpush3.msra.mxu0 %v946_v20 }
 0x2d1   :  { %6358 = vmatprep.subr.mxu0 %v6828_v14  ;;  %6684 = vpow2.f32 %v813_v26 }
 0x2d2   :  { %v7058_v24 = vpop.eup %6678  ;;  %6686 = vpow2.f32 %v817_v33 }
 0x2d3   :  { %v838_v30 = vsel %vm167_vm2, %v7058_v24, 0.0  ;;  %v7099_v55 = vpop.permute.xlu0 %1173 }
 0x2d4   :  { %839 = vadd.xlane.f32.xlu0 %v838_v30 }
 0x2d6   :  { %v7063_v32 = vpop.eup %6680 }
 0x2d7   :  { %v844_v34 = vsel %vm167_vm2, %v7063_v32, 0.0  ;;  %v7101_v56 = vpop.permute.xlu0 %1325 }
 0x2d8   :  { %845 = vadd.xlane.f32.xlu0 %v844_v34 }
 0x2da   :  { %v7067_v35 = vpop.eup %6682 }
 0x2db   :  { %v850_v36 = vsel %vm167_vm2, %v7067_v35, 0.0  ;;  %v7071_v37 = vpop.eup %6684  ;;  %v7105_v58 = vpop.permute.xlu0 %1487 }
 0x2dc   :  { %851 = vadd.xlane.f32.xlu0 %v850_v36  ;;  %v829_v38 = vsel %vm167_vm2, %v7071_v37, 0.0  ;;  %v7075_v39 = vpop.eup %6686 }
 0x2dd   :  { %v835_v40 = vsel %vm167_vm2, %v7075_v39, 0.0 }
 0x2df   :  { %v7109_v61 = vpop.permute.xlu0 %1485 }
 0x2e3   :  { %v7111_v62 = vpop.permute.xlu0 %1643 }
 0x2e5   :  { %830 = vadd.xlane.f32.xlu1 %v829_v38 }
 0x2e9   :  { %836 = vadd.xlane.f32.xlu1 %v835_v40 }
 0x2f2   :  { %1641 = vrot.lane.b32.xlu0 %v6933_v23, %s6833_s17 }
 0x2f4   :  { %v795_v41 = vpop.xlane.xlu1 %794 }
 0x2f5   :  { %v809_v42 = vsub.f32 %v7013_v54, %v795_v41 }
 0x2f6   :  { %1799 = vrot.lane.b32.xlu0 %v6941_v27, %s6832_s16 }
 0x2f7   :  { %v821_v43 = vmul.f32 1.442695, %v809_v42 }
 0x2f8   :  { %v7096_v46 = vpop.permute.xlu1 %1021 }
 0x2f9   :  { %6688 = vpow2.f32 %v821_v43 }
 0x2fa   :  { %1797 = vrot.lane.b32.xlu0 %v6941_v27, %s6833_s17 }
 0x2fc   :  { %v1098_v47 = vpop.permute.xlu1 %1097 }
 0x2fe   :  { %1955 = vrot.lane.b32.xlu0 %v6949_v31, %s6832_s16 }
 0x300   :  { %v1250_v48 = vpop.permute.xlu1 %1249 }
 0x302   :  { %1953 = vrot.lane.b32.xlu0 %v6949_v31, %s6833_s17 }
 0x303   :  { %v7090_v44 = vpop.eup %6688 }
 0x304   :  { %v841_v45 = vsel %vm167_vm2, %v7090_v44, 0.0  ;;  %v1402_v49 = vpop.permute.xlu1 %1401 }
 0x305   :  { %842 = vadd.xlane.f32.xlu1 %v841_v45 }
 0x308   :  { %v1566_v50 = vpop.permute.xlu1 %1565 }
 0x30c   :  { %v1564_v51 = vpop.permute.xlu1 %1563 }
 0x316   :  { %1719 = vrot.lane.b32.xlu1 %v6931_v21, %s6833_s17 }
 0x33d   :  { %v801_v52 = vpop.xlane.xlu1 %800 }
 0x33e   :  { %v811_v53 = vsub.f32 %v7016_v59, %v801_v52 }
 0x340   :  { %v825_v54 = vmul.f32 1.442695, %v811_v53 }
 0x341   :  { %v1722_v6 = vpop.permute.xlu1 %1721 }
 0x342   :  { %6690 = vpow2.f32 %v825_v54 }
 0x34c   :  { %v7103_v57 = vpop.eup %6690 }
 0x34d   :  { %v847_v60 = vsel %vm167_vm2, %v7103_v57, 0.0 }
 0x34e   :  { %848 = vadd.xlane.f32.xlu1 %v847_v60 }
 0x35d   :  { %v834_v63 = vpop.xlane.xlu0 %833 }
 0x35e   :  { %6692 = vrcp.f32 %v834_v63 }
 0x35f   :  { %1877 = vrot.lane.b32.xlu1 %v6939_v25, %s6832_s16 }
 0x361   :  { %v840_v59 = vpop.xlane.xlu0 %839 }
 0x362   :  { %6694 = vrcp.f32 %v840_v59 }
 0x363   :  { %1875 = vrot.lane.b32.xlu1 %v6939_v25, %s6833_s17 }
 0x365   :  { %v846_v0 = vpop.xlane.xlu0 %845 }
 0x366   :  { %6696 = vrcp.f32 %v846_v0 }
 0x367   :  { %2033 = vrot.lane.b32.xlu1 %v6947_v29, %s6832_s16 }
 0x368   :  { %v6693_v1 = vpop.eup %6692 }
 0x369   :  { %v852_v2 = vpop.xlane.xlu0 %851  ;;  %v862_v3 = vmul.f32 %v6693_v1, %v7052_v15 }
 0x36a   :  { %6698 = vrcp.f32 %v852_v2 }
 0x36b   :  { %2031 = vrot.lane.b32.xlu1 %v6947_v29, %s6833_s17  ;;  %6351 = vmatmul.mubr.msk.f32.vlgmr.msra.gmra.mrb[16].mxu0 %vm167_vm2, %v862_v3 }
 0x36c   :  { %v6695_v4 = vpop.eup %6694  ;;  %6359 = vmatpush3.msra.mxu0 %v1098_v47  ;;  %6360 = vmatprep.mubr.msk.f32.mxu0 %vm6829_vm1, %v6828_v14 }
 0x36d   :  { %6368 = vmatprep.subr.mxu0 %v6828_v14  ;;  %v864_v5 = vmul.f32 %v6695_v4, %v7058_v24 }
 0x36f   :  { %6361 = vmatmul.mubr.msk.f32.vlgmr.msra.gmra.mrb[18].mxu0 %vm167_vm2, %v864_v5 }
 0x370   :  { %v6697_v7 = vpop.eup %6696  ;;  %6369 = vmatpush3.msra.mxu0 %v1250_v48  ;;  %6370 = vmatprep.mubr.msk.f32.mxu0 %vm6829_vm1, %v6828_v14 }
 0x371   :  { %6378 = vmatprep.subr.mxu0 %v6828_v14  ;;  %v866_v8 = vmul.f32 %v6697_v7, %v7063_v32  ;;  %v1642_v32 = vpop.permute.xlu0 %1641 }
 0x372   :  { %v831_v9 = vpop.xlane.xlu1 %830 }
 0x373   :  { %6700 = vrcp.f32 %v831_v9  ;;  %6371 = vmatmul.mubr.msk.f32.vlgmr.msra.gmra.mrb[20].mxu0 %vm167_vm2, %v866_v8 }
 0x374   :  { %v6699_v10 = vpop.eup %6698  ;;  %6379 = vmatpush3.msra.mxu0 %v1402_v49  ;;  %6380 = vmatprep.mubr.msk.f32.mxu0 %vm6829_vm1, %v6828_v14 }
 0x375   :  { %v868_v11 = vmul.f32 %v6699_v10, %v7067_v35  ;;  %6388 = vmatprep.subr.mxu0 %v6828_v14  ;;  %v1800_v35 = vpop.permute.xlu0 %1799 }
 0x376   :  { %v837_v12 = vpop.xlane.xlu1 %836 }
 0x377   :  { %6702 = vrcp.f32 %v837_v12  ;;  %6381 = vmatmul.mubr.msk.f32.vlgmr.msra.gmra.mrb[22].mxu0 %vm167_vm2, %v868_v11 }
 0x378   :  { %6390 = vmatprep.mubr.msk.f32.mxu0 %vm6829_vm1, %v6828_v14 }
 0x37b   :  { %6389 = vmatpush3.xpose.msk.msra.mxu0 %vm167_vm2, %v1566_v50 }
 0x37c   :  { %6398 = vmatprep.subr.mxu0 %v6828_v14 }
 0x37d   :  { %v6701_v13 = vpop.eup %6700 }
 0x37e   :  { %6391 = vmatmul.mubr.msk.f32.vlgmr.msra.gmra.mrb[24].mxu0 %vm167_vm2, %v1564_v51  ;;  %v861_v15 = vmul.f32 %v6701_v13, %v7071_v37 }
 0x37f   :  { %6399 = vmatpush3.xpose.msk.msra.mxu0 %vm167_vm2, %v1722_v6  ;;  %6400 = vmatprep.mubr.msk.f32.mxu0 %vm6829_vm1, %v6828_v14 }
 0x380   :  { %6346 = vmatmul.mubr.msk.f32.vlgmr.msra.gmra.mrb[8].mxu1 %vm167_vm2, %v861_v15  ;;  %6408 = vmatprep.subr.mxu0 %v6828_v14 }
 0x381   :  { %v6703_v16 = vpop.eup %6702  ;;  %6354 = vmatpush3.msra.mxu1 %v7096_v46  ;;  %6355 = vmatprep.mubr.msk.f32.mxu1 %vm6829_vm1, %v6828_v14 }
 0x382   :  { %6363 = vmatprep.subr.mxu1 %v6828_v14  ;;  %v863_v18 = vmul.f32 %v6703_v16, %v7075_v39  ;;  %v1798_v39 = vpop.permute.xlu0 %1797 }
 0x384   :  { %6356 = vmatmul.mubr.msk.f32.vlgmr.msra.gmra.mrb[10].mxu1 %vm167_vm2, %v863_v18 }
 0x385   :  { %6364 = vmatpush3.msra.mxu1 %v7099_v55  ;;  %6365 = vmatprep.mubr.msk.f32.mxu1 %vm6829_vm1, %v6828_v14 }
 0x386   :  { %6373 = vmatprep.subr.mxu1 %v6828_v14  ;;  %v1956_v40 = vpop.permute.xlu0 %1955 }
 0x38a   :  { %v1954_v41 = vpop.permute.xlu0 %1953 }
 0x392   :  { %v843_v20 = vpop.xlane.xlu1 %842 }
 0x393   :  { %6704 = vrcp.f32 %v843_v20 }
 0x396   :  { %v1720_v22 = vpop.permute.xlu1 %1719 }
 0x397   :  { %6401 = vmatmul.mubr.msk.f32.vlgmr.msra.gmra.mrb[26].mxu0 %vm167_vm2, %v1720_v22 }
 0x398   :  { %6410 = vmatprep.mubr.msk.f32.mxu0 %vm6829_vm1, %v6828_v14 }
 0x39d   :  { %v6705_v24 = vpop.eup %6704 }
 0x39e   :  { %v865_v26 = vmul.f32 %v6705_v24, %v7090_v44 }
 0x3a0   :  { %6366 = vmatmul.mubr.msk.f32.vlgmr.msra.gmra.mrb[12].mxu1 %vm167_vm2, %v865_v26 }
 0x3a1   :  { %6374 = vmatpush3.msra.mxu1 %v7101_v56  ;;  %6375 = vmatprep.mubr.msk.f32.mxu1 %vm6829_vm1, %v6828_v14 }
 0x3a2   :  { %6383 = vmatprep.subr.mxu1 %v6828_v14 }
 0x3db   :  { %v849_v28 = vpop.xlane.xlu1 %848 }
 0x3dc   :  { %6706 = vrcp.f32 %v849_v28 }
 0x3df   :  { %v1878_v30 = vpop.permute.xlu1 %1877 }
 0x3e0   :  { %6409 = vmatpush3.xpose.msk.msra.mxu0 %vm167_vm2, %v1878_v30 }
 0x3e1   :  { %6418 = vmatprep.subr.mxu0 %v6828_v14 }
 0x3e3   :  { %v1876_v33 = vpop.permute.xlu1 %1875 }
 0x3e4   :  { %6411 = vmatmul.mubr.msk.f32.vlgmr.msra.gmra.mrb[28].mxu0 %vm167_vm2, %v1876_v33 }
 0x3e5   :  { %6420 = vmatprep.mubr.msk.f32.mxu0 %vm6829_vm1, %v6828_v14 }
 0x3e6   :  { %v6707_v34 = vpop.eup %6706 }
 0x3e7   :  { %v2034_v36 = vpop.permute.xlu1 %2033  ;;  %v867_v37 = vmul.f32 %v6707_v34, %v7103_v57 }
 0x3e8   :  { %6419 = vmatpush3.xpose.msk.msra.mxu0 %vm167_vm2, %v2034_v36 }
 0x3e9   :  { %6376 = vmatmul.mubr.msk.f32.vlgmr.msra.gmra.mrb[14].mxu1 %vm167_vm2, %v867_v37  ;;  %6428 = vmatprep.subr.mxu0 %v6828_v14 }
 0x3ea   :  { %6384 = vmatpush3.xpose.msk.msra.mxu1 %vm167_vm2, %v7105_v58  ;;  %6385 = vmatprep.mubr.msk.f32.mxu1 %vm6829_vm1, %v6828_v14 }
 0x3eb   :  { %v2032_v38 = vpop.permute.xlu1 %2031  ;;  %6393 = vmatprep.subr.mxu1 %v6828_v14 }
 0x3ec   :  { %6421 = vmatmul.mubr.msk.f32.vlgmr.msra.gmra.mrb[30].mxu0 %vm167_vm2, %v2032_v38 }
 0x3ed   :  { %6386 = vmatmul.mubr.msk.f32.vlgmr.msra.gmra.mrb[16].mxu1 %vm167_vm2, %v7109_v61  ;;  %6430 = vmatprep.mubr.msk.f32.mxu0 %vm6829_vm1, %v6828_v14 }
 0x3ee   :  { %6394 = vmatpush3.xpose.msk.msra.mxu1 %vm167_vm2, %v7111_v62  ;;  %6395 = vmatprep.mubr.msk.f32.mxu1 %vm6829_vm1, %v6828_v14 }
 0x3ef   :  { %6403 = vmatprep.subr.mxu1 %v6828_v14 }
 0x3f1   :  { %6396 = vmatmul.mubr.msk.f32.vlgmr.msra.gmra.mrb[18].mxu1 %vm167_vm2, %v1642_v32 }
 0x3f2   :  { %6404 = vmatpush3.xpose.msk.msra.mxu1 %vm167_vm2, %v1800_v35  ;;  %6405 = vmatprep.mubr.msk.f32.mxu1 %vm6829_vm1, %v6828_v14 }
 0x3f3   :  { %6413 = vmatprep.subr.mxu1 %v6828_v14 }
 0x3f5   :  { %6406 = vmatmul.mubr.msk.f32.vlgmr.msra.gmra.mrb[20].mxu1 %vm167_vm2, %v1798_v39 }
 0x3f6   :  { %6414 = vmatpush3.xpose.msk.msra.mxu1 %vm167_vm2, %v1956_v40  ;;  %6415 = vmatprep.mubr.msk.f32.mxu1 %vm6829_vm1, %v6828_v14 }
 0x3f7   :  { %6423 = vmatprep.subr.mxu1 %v6828_v14 }
 0x3f9   :  { %6416 = vmatmul.mubr.msk.f32.vlgmr.msra.gmra.mrb[22].mxu1 %vm167_vm2, %v1954_v41 }
 0x3fa   :  { %6425 = vmatprep.mubr.msk.f32.mxu1 %vm6829_vm1, %v6828_v14 }
 0x43e   :  { %v1017_v42 = vpop.f32.mrb[16].mxu0 }
 0x43f   :  { %1478 = vst.msk [vmem:[#allocation2 + $0x8] sm:$0xff] %vm167_vm2, %v1017_v42  ;;  %v6352_v43 = vpop.f32.mrb[17].mxu0 }
 0x442   :  { %v1169_v44 = vpop.f32.mrb[18].mxu0 }
 0x443   :  { %1480 = vst.msk [vmem:[#allocation2 + $0x18] sm:$0xff] %vm167_vm2, %v1169_v44  ;;  %v6362_v45 = vpop.f32.mrb[19].mxu0 }
 0x446   :  { %v1321_v46 = vpop.f32.mrb[20].mxu0 }
 0x447   :  { %1482 = vst.msk [vmem:[#allocation2 + $0x28] sm:$0xff] %vm167_vm2, %v1321_v46  ;;  %v6372_v47 = vpop.f32.mrb[21].mxu0 }
 0x44a   :  { %v1473_v48 = vpop.f32.mrb[22].mxu0 }
 0x44b   :  { %1484 = vst.msk [vmem:[#allocation2 + $0x38] sm:$0xff] %vm167_vm2, %v1473_v48  ;;  %v6382_v49 = vpop.f32.mrb[23].mxu0 }
 0x451   :  { %v1637_v50 = vpop.f32.mrb[24].mxu0 }
 0x452   :  { %v6392_v51 = vpop.f32.mrb[25].mxu0  ;;  %v2112_v52 = vsel %vm167_vm2, %v1637_v50, -inf }
 0x453   :  { %2113 = vmax.xlane.f32.xlu1 %v2112_v52  ;;  %v941_v53 = vpop.f32.mrb[8].mxu1 }
 0x454   :  { %1477 = vst.msk [vmem:[#allocation2] sm:$0xff] %vm167_vm2, %v941_v53  ;;  %v6347_v54 = vpop.f32.mrb[9].mxu1 }
 0x457   :  { %v1093_v55 = vpop.f32.mrb[10].mxu1 }
 0x458   :  { %1479 = vst.msk [vmem:[#allocation2 + $0x10] sm:$0xff] %vm167_vm2, %v1093_v55  ;;  %v6357_v56 = vpop.f32.mrb[11].mxu1 }
 0x46a   :  { %v7212_v57 = vpop.f32.mrb[26].mxu0 }
 0x46b   :  { %v6402_v58 = vpop.f32.mrb[27].mxu0  ;;  %v2118_v11 = vsel %vm167_vm2, %v7212_v57, -inf }
 0x473   :  { %v1245_v60 = vpop.f32.mrb[12].mxu1 }
 0x474   :  { %1481 = vst.msk [vmem:[#allocation2 + $0x20] sm:$0xff] %vm167_vm2, %v1245_v60  ;;  %v6367_v61 = vpop.f32.mrb[13].mxu1 }
 0x4b7   :  { %v7215_v62 = vpop.f32.mrb[28].mxu0 }
 0x4b8   :  { %v6412_v63 = vpop.f32.mrb[29].mxu0  ;;  %v2124_v16 = vsel %vm167_vm2, %v7215_v62, -inf }
 0x4bc   :  { %v1397_v59 = vpop.f32.mrb[14].mxu1 }
 0x4bd   :  { %1483 = vst.msk [vmem:[#allocation2 + $0x30] sm:$0xff] %vm167_vm2, %v1397_v59  ;;  %v6377_v0 = vpop.f32.mrb[15].mxu1 }
 0x4bf   :  { %v7218_v1 = vpop.f32.mrb[30].mxu0 }
 0x4c0   :  { %v1559_v2 = vpop.f32.mrb[16].mxu1  ;;  %v6422_v3 = vpop.f32.mrb[31].mxu0  ;;  %v2130_v18 = vsel %vm167_vm2, %v7218_v1, -inf }
 0x4c1   :  { %v6387_v4 = vpop.f32.mrb[17].mxu1  ;;  %v2109_v5 = vsel %vm167_vm2, %v1559_v2, -inf }
 0x4c2   :  { %2110 = vmax.xlane.f32.xlu0 %v2109_v5 }
 0x4c4   :  { %v1715_v6 = vpop.f32.mrb[18].mxu1 }
 0x4c5   :  { %v6397_v7 = vpop.f32.mrb[19].mxu1  ;;  %v2115_v8 = vsel %vm167_vm2, %v1715_v6, -inf }
 0x4c6   :  { %2116 = vmax.xlane.f32.xlu0 %v2115_v8 }
 0x4c8   :  { %v1871_v9 = vpop.f32.mrb[20].mxu1 }
 0x4c9   :  { %v6407_v10 = vpop.f32.mrb[21].mxu1  ;;  %v2121_v12 = vsel %vm167_vm2, %v1871_v9, -inf }
 0x4ca   :  { %2119 = vmax.xlane.f32.xlu0 %v2118_v11  ;;  %2122 = vmax.xlane.f32.xlu1 %v2121_v12 }
 0x4cc   :  { %v7225_v13 = vpop.f32.mrb[22].mxu1 }
 0x4cd   :  { %v6417_v15 = vpop.f32.mrb[23].mxu1  ;;  %v2127_v20 = vsel %vm167_vm2, %v7225_v13, -inf }
 0x4ce   :  { %2125 = vmax.xlane.f32.xlu0 %v2124_v16 }
 0x4d2   :  { %2131 = vmax.xlane.f32.xlu0 %v2130_v18 }
 0x4db   :  { %2197 = vrot.lane.b32.xlu1 %v6925_v19, %s6834_s18 }
 0x4e0   :  { %v2114_v22 = vpop.xlane.xlu1 %2113 }
 0x4e1   :  { %v2134_v24 = vsub.f32 %v1637_v50, %v2114_v22 }
 0x4e3   :  { %v2143_v26 = vmul.f32 1.442695, %v2134_v24 }
 0x4e5   :  { %6708 = vpow2.f32 %v2143_v26 }
 0x4e8   :  { %2273 = vrot.lane.b32.xlu0 %v6923_v17, %s6834_s18 }
 0x4ec   :  { %2501 = vrot.lane.b32.xlu0 %v6941_v27, %s6834_s18 }
 0x4ef   :  { %v7245_v28 = vpop.eup %6708 }
 0x4f0   :  { %2653 = vrot.lane.b32.xlu0 %v6949_v31, %s6834_s18  ;;  %v2160_v30 = vsel %vm167_vm2, %v7245_v28, 0.0 }
 0x4f4   :  { %2848 = vrot.lane.b32.xlu0 %v6925_v19, %s6835_s19 }
 0x4f8   :  { %2846 = vrot.lane.b32.xlu0 %v6925_v19, %s6836_s20 }
 0x4fc   :  { %3004 = vrot.lane.b32.xlu0 %v6933_v23, %s6835_s19 }
 0x4ff   :  { %2128 = vmax.xlane.f32.xlu1 %v2127_v20 }
 0x510   :  { %2349 = vrot.lane.b32.xlu1 %v6933_v23, %s6834_s18 }
 0x514   :  { %2425 = vrot.lane.b32.xlu1 %v6931_v21, %s6834_s18 }
 0x518   :  { %2577 = vrot.lane.b32.xlu1 %v6939_v25, %s6834_s18 }
 0x51b   :  { %2161 = vadd.xlane.f32.xlu0 %v2160_v30 }
 0x51c   :  { %2729 = vrot.lane.b32.xlu1 %v6947_v29, %s6834_s18 }
 0x520   :  { %2926 = vrot.lane.b32.xlu1 %v6923_v17, %s6835_s19 }
 0x524   :  { %2924 = vrot.lane.b32.xlu1 %v6923_v17, %s6836_s20 }
 0x528   :  { %3082 = vrot.lane.b32.xlu1 %v6931_v21, %s6835_s19 }
 0x54f   :  { %v2111_v32 = vpop.xlane.xlu0 %2110 }
 0x550   :  { %v2133_v33 = vsub.f32 %v1559_v2, %v2111_v32 }
 0x552   :  { %v2141_v34 = vmul.f32 1.442695, %v2133_v33 }
 0x553   :  { %v2117_v35 = vpop.xlane.xlu0 %2116 }
 0x554   :  { %6710 = vpow2.f32 %v2141_v34  ;;  %v2135_v36 = vsub.f32 %v1715_v6, %v2117_v35 }
 0x556   :  { %v2145_v37 = vmul.f32 1.442695, %v2135_v36 }
 0x557   :  { %v2123_v38 = vpop.xlane.xlu1 %2122  ;;  %v2120_v39 = vpop.xlane.xlu0 %2119 }
 0x558   :  { %6712 = vpow2.f32 %v2145_v37  ;;  %v2137_v40 = vsub.f32 %v1871_v9, %v2123_v38  ;;  %v2136_v41 = vsub.f32 %v7212_v57, %v2120_v39 }
 0x55a   :  { %v2149_v42 = vmul.f32 1.442695, %v2137_v40  ;;  %v2147_v43 = vmul.f32 1.442695, %v2136_v41 }
 0x55b   :  { %v2198_v44 = vpop.permute.xlu1 %2197  ;;  %v2126_v45 = vpop.xlane.xlu0 %2125 }
 0x55c   :  { %6714 = vpow2.f32 %v2149_v42  ;;  %v2138_v46 = vsub.f32 %v7215_v62, %v2126_v45  ;;  %6424 = vmatpush3.msra.mxu1 %v2198_v44 }
 0x55d   :  { %6716 = vpow2.f32 %v2147_v43  ;;  %6433 = vmatprep.subr.mxu1 %v6828_v14 }
 0x55e   :  { %v7260_v47 = vpop.eup %6710  ;;  %v2151_v48 = vmul.f32 1.442695, %v2138_v46 }
 0x55f   :  { %v2132_v49 = vpop.xlane.xlu0 %2131  ;;  %v2157_v50 = vsel %vm167_vm2, %v7260_v47, 0.0 }
 0x560   :  { %6718 = vpow2.f32 %v2151_v48  ;;  %v2140_v51 = vsub.f32 %v7218_v1, %v2132_v49  ;;  %2158 = vadd.xlane.f32.xlu1 %v2157_v50 }
 0x562   :  { %v7265_v52 = vpop.eup %6712  ;;  %v2155_v53 = vmul.f32 1.442695, %v2140_v51 }
 0x563   :  { %v2274_v54 = vpop.permute.xlu0 %2273  ;;  %v2163_v55 = vsel %vm167_vm2, %v7265_v52, 0.0 }
 0x564   :  { %6720 = vpow2.f32 %v2155_v53  ;;  %2164 = vadd.xlane.f32.xlu1 %v2163_v55  ;;  %6429 = vmatpush3.msra.mxu0 %v2274_v54 }
 0x565   :  { %6438 = vmatprep.subr.mxu0 %v6828_v14 }
 0x566   :  { %v7270_v56 = vpop.eup %6714 }
 0x567   :  { %v7272_v57 = vpop.eup %6716  ;;  %v2169_v58 = vsel %vm167_vm2, %v7270_v56, 0.0  ;;  %v7290_v0 = vpop.permute.xlu0 %2501 }
 0x568   :  { %2170 = vadd.xlane.f32.xlu1 %v2169_v58  ;;  %v2166_v60 = vsel %vm167_vm2, %v7272_v57, 0.0 }
 0x569   :  { %2167 = vadd.xlane.f32.xlu0 %v2166_v60 }
 0x56a   :  { %v7278_v61 = vpop.eup %6718 }
 0x56b   :  { %v2172_v62 = vsel %vm167_vm2, %v7278_v61, 0.0  ;;  %v7295_v4 = vpop.permute.xlu0 %2653 }
 0x56d   :  { %2173 = vadd.xlane.f32.xlu0 %v2172_v62 }
 0x56e   :  { %v7282_v63 = vpop.eup %6720 }
 0x56f   :  { %v2178_v59 = vsel %vm167_vm2, %v7282_v63, 0.0  ;;  %v7301_v5 = vpop.permute.xlu0 %2848 }
 0x571   :  { %2179 = vadd.xlane.f32.xlu0 %v2178_v59 }
 0x573   :  { %v7309_v8 = vpop.permute.xlu0 %2846 }
 0x577   :  { %v7315_v9 = vpop.permute.xlu0 %3004 }
 0x587   :  { %3002 = vrot.lane.b32.xlu0 %v6933_v23, %s6836_s20 }
 0x58b   :  { %3160 = vrot.lane.b32.xlu0 %v6941_v27, %s6835_s19 }
 0x58c   :  { %v2129_v1 = vpop.xlane.xlu1 %2128 }
 0x58d   :  { %v2139_v2 = vsub.f32 %v7225_v13, %v2129_v1 }
 0x58f   :  { %v2153_v3 = vmul.f32 1.442695, %v2139_v2  ;;  %3158 = vrot.lane.b32.xlu0 %v6941_v27, %s6836_s20 }
 0x590   :  { %v2350_v11 = vpop.permute.xlu1 %2349 }
 0x591   :  { %6722 = vpow2.f32 %v2153_v3 }
 0x593   :  { %3316 = vrot.lane.b32.xlu0 %v6949_v31, %s6835_s19 }
 0x594   :  { %v2426_v15 = vpop.permute.xlu1 %2425 }
 0x597   :  { %3314 = vrot.lane.b32.xlu0 %v6949_v31, %s6836_s20 }
 0x598   :  { %v2578_v16 = vpop.permute.xlu1 %2577 }
 0x59b   :  { %v7303_v6 = vpop.eup %6722  ;;  %3634 = vrot.lane.b32.xlu0 %v6923_v17, %s6837_s21 }
 0x59c   :  { %v2175_v7 = vsel %vm167_vm2, %v7303_v6, 0.0  ;;  %v2730_v18 = vpop.permute.xlu1 %2729 }
 0x59d   :  { %2176 = vadd.xlane.f32.xlu1 %v2175_v7 }
 0x59f   :  { %3862 = vrot.lane.b32.xlu0 %v6941_v27, %s6837_s21 }
 0x5a0   :  { %v2927_v20 = vpop.permute.xlu1 %2926 }
 0x5a3   :  { %4014 = vrot.lane.b32.xlu0 %v6949_v31, %s6837_s21 }
 0x5a4   :  { %v2925_v22 = vpop.permute.xlu1 %2924 }
 0x5a7   :  { %4209 = vrot.lane.b32.xlu0 %v6925_v19, %s6838_s22 }
 0x5a8   :  { %v2162_v10 = vpop.xlane.xlu0 %2161  ;;  %v3083_v24 = vpop.permute.xlu1 %3082 }
 0x5a9   :  { %6724 = vrcp.f32 %v2162_v10 }
 0x5ab   :  { %4207 = vrot.lane.b32.xlu0 %v6925_v19, %s6839_s23 }
 0x5ae   :  { %3080 = vrot.lane.b32.xlu1 %v6931_v21, %s6836_s20 }
 0x5b2   :  { %3238 = vrot.lane.b32.xlu1 %v6939_v25, %s6835_s19 }
 0x5b3   :  { %v6725_v12 = vpop.eup %6724 }
 0x5b4   :  { %v2190_v13 = vmul.f32 %v6725_v12, %v7245_v28 }
 0x5b6   :  { %3236 = vrot.lane.b32.xlu1 %v6939_v25, %s6836_s20  ;;  %6431 = vmatmul.mubr.msk.f32.vlgmr.msra.gmra.mrb[32].mxu0 %vm167_vm2, %v2190_v13 }
 0x5b7   :  { %6439 = vmatpush3.msra.mxu0 %v2426_v15  ;;  %6440 = vmatprep.mubr.msk.f32.mxu0 %vm6829_vm1, %v6828_v14 }
 0x5b8   :  { %6448 = vmatprep.subr.mxu0 %v6828_v14 }
 0x5ba   :  { %3394 = vrot.lane.b32.xlu1 %v6947_v29, %s6835_s19 }
 0x5be   :  { %3392 = vrot.lane.b32.xlu1 %v6947_v29, %s6836_s20 }
 0x5c2   :  { %3558 = vrot.lane.b32.xlu1 %v6925_v19, %s6837_s21 }
 0x5c6   :  { %3710 = vrot.lane.b32.xlu1 %v6933_v23, %s6837_s21 }
 0x5ca   :  { %3786 = vrot.lane.b32.xlu1 %v6931_v21, %s6837_s21 }
 0x5ce   :  { %3938 = vrot.lane.b32.xlu1 %v6939_v25, %s6837_s21 }
 0x5d2   :  { %4090 = vrot.lane.b32.xlu1 %v6947_v29, %s6837_s21 }
 0x5d6   :  { %4287 = vrot.lane.b32.xlu1 %v6923_v17, %s6838_s22 }
 0x5da   :  { %4285 = vrot.lane.b32.xlu1 %v6923_v17, %s6839_s23 }
 0x5ed   :  { %v2159_v26 = vpop.xlane.xlu1 %2158 }
 0x5ee   :  { %6726 = vrcp.f32 %v2159_v26 }
 0x5f1   :  { %v2165_v28 = vpop.xlane.xlu1 %2164 }
 0x5f2   :  { %6728 = vrcp.f32 %v2165_v28 }
 0x5f5   :  { %v2171_v30 = vpop.xlane.xlu1 %2170 }
 0x5f6   :  { %6730 = vrcp.f32 %v2171_v30  ;;  %v2168_v32 = vpop.xlane.xlu0 %2167 }
 0x5f7   :  { %6732 = vrcp.f32 %v2168_v32 }
 0x5f8   :  { %v6727_v33 = vpop.eup %6726 }
 0x5f9   :  { %v2189_v34 = vmul.f32 %v6727_v33, %v7260_v47 }
 0x5fa   :  { %v2174_v35 = vpop.xlane.xlu0 %2173 }
 0x5fb   :  { %6734 = vrcp.f32 %v2174_v35  ;;  %6426 = vmatmul.mubr.msk.f32.vlgmr.msra.gmra.mrb[24].mxu1 %vm167_vm2, %v2189_v34 }
 0x5fc   :  { %v6729_v36 = vpop.eup %6728  ;;  %6434 = vmatpush3.msra.mxu1 %v2350_v11  ;;  %6435 = vmatprep.mubr.msk.f32.mxu1 %vm6829_vm1, %v6828_v14 }
 0x5fd   :  { %6443 = vmatprep.subr.mxu1 %v6828_v14  ;;  %v2191_v37 = vmul.f32 %v6729_v36, %v7265_v52 }
 0x5fe   :  { %v2180_v38 = vpop.xlane.xlu0 %2179 }
 0x5ff   :  { %6736 = vrcp.f32 %v2180_v38  ;;  %6436 = vmatmul.mubr.msk.f32.vlgmr.msra.gmra.mrb[26].mxu1 %vm167_vm2, %v2191_v37 }
 0x600   :  { %v6731_v39 = vpop.eup %6730  ;;  %6444 = vmatpush3.msra.mxu1 %v7290_v0  ;;  %6445 = vmatprep.mubr.msk.f32.mxu1 %vm6829_vm1, %v6828_v14 }
 0x601   :  { %v6733_v40 = vpop.eup %6732  ;;  %6453 = vmatprep.subr.mxu1 %v6828_v14  ;;  %v2193_v41 = vmul.f32 %v6731_v39, %v7270_v56 }
 0x602   :  { %v2192_v42 = vmul.f32 %v6733_v40, %v7272_v57  ;;  %v3003_v47 = vpop.permute.xlu0 %3002 }
 0x603   :  { %6446 = vmatmul.mubr.msk.f32.vlgmr.msra.gmra.mrb[28].mxu1 %vm167_vm2, %v2193_v41 }
 0x604   :  { %6441 = vmatmul.mubr.msk.f32.vlgmr.msra.gmra.mrb[34].mxu0 %vm167_vm2, %v2192_v42  ;;  %6454 = vmatpush3.msra.mxu1 %v7295_v4 }
 0x605   :  { %v6735_v43 = vpop.eup %6734  ;;  %6449 = vmatpush3.msra.mxu0 %v2578_v16  ;;  %6450 = vmatprep.mubr.msk.f32.mxu0 %vm6829_vm1, %v6828_v14 }
 0x606   :  { %6458 = vmatprep.subr.mxu0 %v6828_v14  ;;  %v2194_v44 = vmul.f32 %v6735_v43, %v7278_v61  ;;  %6455 = vmatprep.mubr.msk.f32.mxu1 %vm6829_vm1, %v6828_v14  ;;  %v3161_v48 = vpop.permute.xlu0 %3160 }
 0x607   :  { %6463 = vmatprep.subr.mxu1 %v6828_v14 }
 0x608   :  { %6451 = vmatmul.mubr.msk.f32.vlgmr.msra.gmra.mrb[36].mxu0 %vm167_vm2, %v2194_v44 }
 0x609   :  { %v6737_v45 = vpop.eup %6736  ;;  %6459 = vmatpush3.msra.mxu0 %v2730_v18  ;;  %6460 = vmatprep.mubr.msk.f32.mxu0 %vm6829_vm1, %v6828_v14 }
 0x60a   :  { %v2196_v46 = vmul.f32 %v6737_v45, %v7282_v63  ;;  %6468 = vmatprep.subr.mxu0 %v6828_v14  ;;  %v3159_v50 = vpop.permute.xlu0 %3158 }
 0x60c   :  { %6461 = vmatmul.mubr.msk.f32.vlgmr.msra.gmra.mrb[38].mxu0 %vm167_vm2, %v2196_v46 }
 0x60d   :  { %6470 = vmatprep.mubr.msk.f32.mxu0 %vm6829_vm1, %v6828_v14 }
 0x60e   :  { %v3317_v53 = vpop.permute.xlu0 %3316 }
 0x610   :  { %6469 = vmatpush3.xpose.msk.msra.mxu0 %vm167_vm2, %v2927_v20 }
 0x611   :  { %6478 = vmatprep.subr.mxu0 %v6828_v14 }
 0x612   :  { %v3315_v57 = vpop.permute.xlu0 %3314 }
 0x613   :  { %6471 = vmatmul.mubr.msk.f32.vlgmr.msra.gmra.mrb[40].mxu0 %vm167_vm2, %v2925_v22 }
 0x614   :  { %6479 = vmatpush3.xpose.msk.msra.mxu0 %vm167_vm2, %v3083_v24  ;;  %6480 = vmatprep.mubr.msk.f32.mxu0 %vm6829_vm1, %v6828_v14 }
 0x615   :  { %6488 = vmatprep.subr.mxu0 %v6828_v14 }
 0x616   :  { %v3635_v61 = vpop.permute.xlu0 %3634 }
 0x62a   :  { %v2177_v49 = vpop.xlane.xlu1 %2176 }
 0x62b   :  { %6738 = vrcp.f32 %v2177_v49 }
 0x62e   :  { %v3081_v51 = vpop.permute.xlu1 %3080 }
 0x62f   :  { %6481 = vmatmul.mubr.msk.f32.vlgmr.msra.gmra.mrb[42].mxu0 %vm167_vm2, %v3081_v51 }
 0x630   :  { %6490 = vmatprep.mubr.msk.f32.mxu0 %vm6829_vm1, %v6828_v14 }
 0x632   :  { %v3239_v52 = vpop.permute.xlu1 %3238 }
 0x633   :  { %6489 = vmatpush3.xpose.msk.msra.mxu0 %vm167_vm2, %v3239_v52 }
 0x634   :  { %6498 = vmatprep.subr.mxu0 %v6828_v14 }
 0x635   :  { %v6739_v54 = vpop.eup %6738 }
 0x636   :  { %v3237_v55 = vpop.permute.xlu1 %3236  ;;  %v2195_v56 = vmul.f32 %v6739_v54, %v7303_v6 }
 0x637   :  { %6491 = vmatmul.mubr.msk.f32.vlgmr.msra.gmra.mrb[44].mxu0 %vm167_vm2, %v3237_v55 }
 0x638   :  { %6456 = vmatmul.mubr.msk.f32.vlgmr.msra.gmra.mrb[30].mxu1 %vm167_vm2, %v2195_v56  ;;  %6500 = vmatprep.mubr.msk.f32.mxu0 %vm6829_vm1, %v6828_v14 }
 0x639   :  { %6464 = vmatpush3.xpose.msk.msra.mxu1 %vm167_vm2, %v7301_v5  ;;  %6465 = vmatprep.mubr.msk.f32.mxu1 %vm6829_vm1, %v6828_v14 }
 0x63a   :  { %v3395_v58 = vpop.permute.xlu1 %3394  ;;  %6473 = vmatprep.subr.mxu1 %v6828_v14 }
 0x63b   :  { %6499 = vmatpush3.xpose.msk.msra.mxu0 %vm167_vm2, %v3395_v58  ;;  %v7483_v58 = vpop.permute.xlu0 %3862 }
 0x63c   :  { %6466 = vmatmul.mubr.msk.f32.vlgmr.msra.gmra.mrb[32].mxu1 %vm167_vm2, %v7309_v8  ;;  %6508 = vmatprep.subr.mxu0 %v6828_v14 }
 0x63d   :  { %6474 = vmatpush3.xpose.msk.msra.mxu1 %vm167_vm2, %v7315_v9  ;;  %6475 = vmatprep.mubr.msk.f32.mxu1 %vm6829_vm1, %v6828_v14 }
 0x63e   :  { %v3393_v60 = vpop.permute.xlu1 %3392  ;;  %6483 = vmatprep.subr.mxu1 %v6828_v14 }
 0x63f   :  { %6501 = vmatmul.mubr.msk.f32.vlgmr.msra.gmra.mrb[46].mxu0 %vm167_vm2, %v3393_v60  ;;  %v7485_v60 = vpop.permute.xlu0 %4014 }
 0x640   :  { %6509 = vmatpush3.msra.mxu0 %v3635_v61  ;;  %6476 = vmatmul.mubr.msk.f32.vlgmr.msra.gmra.mrb[34].mxu1 %vm167_vm2, %v3003_v47 }
 0x641   :  { %6484 = vmatpush3.xpose.msk.msra.mxu1 %vm167_vm2, %v3161_v48  ;;  %6485 = vmatprep.mubr.msk.f32.mxu1 %vm6829_vm1, %v6828_v14 }
 0x642   :  { %6493 = vmatprep.subr.mxu1 %v6828_v14  ;;  %6510 = vmatprep.mubr.msk.f32.mxu0 %vm6829_vm1, %v6828_v14  ;;  %v3559_v62 = vpop.permute.xlu1 %3558 }
 0x643   :  { %6518 = vmatprep.subr.mxu0 %v6828_v14  ;;  %v7487_v61 = vpop.permute.xlu0 %4209 }
 0x644   :  { %6486 = vmatmul.mubr.msk.f32.vlgmr.msra.gmra.mrb[36].mxu1 %vm167_vm2, %v3159_v50 }
 0x645   :  { %6494 = vmatpush3.xpose.msk.msra.mxu1 %vm167_vm2, %v3317_v53  ;;  %6495 = vmatprep.mubr.msk.f32.mxu1 %vm6829_vm1, %v6828_v14 }
 0x646   :  { %6503 = vmatprep.subr.mxu1 %v6828_v14  ;;  %v7467_v47 = vpop.permute.xlu1 %3710 }
 0x648   :  { %6496 = vmatmul.mubr.msk.f32.vlgmr.msra.gmra.mrb[38].mxu1 %vm167_vm2, %v3315_v57 }
 0x649   :  { %6504 = vmatpush3.msra.mxu1 %v3559_v62  ;;  %6505 = vmatprep.mubr.msk.f32.mxu1 %vm6829_vm1, %v6828_v14  ;;  %v7489_v62 = vpop.permute.xlu0 %4207 }
 0x64a   :  { %6513 = vmatprep.subr.mxu1 %v6828_v14  ;;  %v7469_v48 = vpop.permute.xlu1 %3786 }
 0x64e   :  { %v7471_v49 = vpop.permute.xlu1 %3938 }
 0x652   :  { %v7473_v50 = vpop.permute.xlu1 %4090 }
 0x656   :  { %v7475_v51 = vpop.permute.xlu1 %4287 }
 0x65a   :  { %v7477_v52 = vpop.permute.xlu1 %4285 }
 0x689   :  { %v7430_v63 = vpop.f32.mrb[32].mxu0 }
 0x68a   :  { %v6432_v59 = vpop.f32.mrb[33].mxu0 }
 0x6ce   :  { %v7432_v0 = vpop.f32.mrb[24].mxu1 }
 0x6cf   :  { %v6427_v1 = vpop.f32.mrb[25].mxu1 }
 0x6d2   :  { %v7434_v2 = vpop.f32.mrb[26].mxu1 }
 0x6d3   :  { %v6437_v3 = vpop.f32.mrb[27].mxu1 }
 0x6d6   :  { %v7436_v4 = vpop.f32.mrb[28].mxu1 }
 0x6d7   :  { %v7438_v5 = vpop.f32.mrb[34].mxu0  ;;  %v6447_v6 = vpop.f32.mrb[29].mxu1 }
 0x6d8   :  { %v6442_v7 = vpop.f32.mrb[35].mxu0 }
 0x6db   :  { %v7440_v8 = vpop.f32.mrb[36].mxu0 }
 0x6dc   :  { %v6452_v9 = vpop.f32.mrb[37].mxu0 }
 0x6df   :  { %v7442_v10 = vpop.f32.mrb[38].mxu0 }
 0x6e0   :  { %v6462_v11 = vpop.f32.mrb[39].mxu0 }
 0x6e6   :  { %v2998_v12 = vpop.f32.mrb[40].mxu0 }
 0x6e7   :  { %v6472_v13 = vpop.f32.mrb[41].mxu0  ;;  %v3473_v15 = vsel %vm167_vm2, %v2998_v12, -inf }
 0x6e8   :  { %3474 = vmax.xlane.f32.xlu1 %v3473_v15 }
 0x702   :  { %v3154_v16 = vpop.f32.mrb[42].mxu0 }
 0x703   :  { %v6482_v18 = vpop.f32.mrb[43].mxu0  ;;  %v3479_v40 = vsel %vm167_vm2, %v3154_v16, -inf }
 0x70a   :  { %v7445_v20 = vpop.f32.mrb[44].mxu0 }
 0x70b   :  { %v7447_v22 = vpop.f32.mrb[30].mxu1  ;;  %v6492_v24 = vpop.f32.mrb[45].mxu0  ;;  %v3485_v44 = vsel %vm167_vm2, %v7445_v20, -inf }
 0x70c   :  { %v6457_v26 = vpop.f32.mrb[31].mxu1 }
 0x70f   :  { %v2920_v28 = vpop.f32.mrb[32].mxu1 }
 0x710   :  { %v6467_v30 = vpop.f32.mrb[33].mxu1  ;;  %v3470_v32 = vsel %vm167_vm2, %v2920_v28, -inf }
 0x711   :  { %3471 = vmax.xlane.f32.xlu0 %v3470_v32 }
 0x712   :  { %v7450_v33 = vpop.f32.mrb[46].mxu0 }
 0x713   :  { %v3076_v34 = vpop.f32.mrb[34].mxu1  ;;  %v6502_v35 = vpop.f32.mrb[47].mxu0  ;;  %v3491_v46 = vsel %vm167_vm2, %v7450_v33, -inf }
 0x714   :  { %v6477_v36 = vpop.f32.mrb[35].mxu1  ;;  %v3476_v37 = vsel %vm167_vm2, %v3076_v34, -inf }
 0x715   :  { %3477 = vmax.xlane.f32.xlu0 %v3476_v37 }
 0x717   :  { %v3232_v38 = vpop.f32.mrb[36].mxu1 }
 0x718   :  { %v6487_v39 = vpop.f32.mrb[37].mxu1  ;;  %v3482_v41 = vsel %vm167_vm2, %v3232_v38, -inf }
 0x719   :  { %3480 = vmax.xlane.f32.xlu0 %v3479_v40  ;;  %3483 = vmax.xlane.f32.xlu1 %v3482_v41 }
 0x71b   :  { %v7455_v42 = vpop.f32.mrb[38].mxu1 }
 0x71c   :  { %v6497_v43 = vpop.f32.mrb[39].mxu1  ;;  %v3488_v45 = vsel %vm167_vm2, %v7455_v42, -inf }
 0x71d   :  { %3486 = vmax.xlane.f32.xlu0 %v3485_v44  ;;  %3489 = vmax.xlane.f32.xlu1 %v3488_v45 }
 0x721   :  { %3492 = vmax.xlane.f32.xlu0 %v3491_v46 }
 0x72e   :  { %4443 = vrot.lane.b32.xlu1 %v6931_v21, %s6838_s22 }
 0x737   :  { %4365 = vrot.lane.b32.xlu0 %v6933_v23, %s6838_s22 }
 0x775   :  { %v3475_v53 = vpop.xlane.xlu1 %3474 }
 0x776   :  { %v3495_v54 = vsub.f32 %v2998_v12, %v3475_v53 }
 0x778   :  { %v3504_v55 = vmul.f32 1.442695, %v3495_v54 }
 0x77a   :  { %6740 = vpow2.f32 %v3504_v55 }
 0x784   :  { %v7479_v56 = vpop.eup %6740 }
 0x785   :  { %v3521_v57 = vsel %vm167_vm2, %v7479_v56, 0.0 }
 0x786   :  { %3522 = vadd.xlane.f32.xlu0 %v3521_v57 }
 0x79e   :  { %v3472_v59 = vpop.xlane.xlu0 %3471 }
 0x79f   :  { %v3494_v1 = vsub.f32 %v2920_v28, %v3472_v59 }
 0x7a1   :  { %v3502_v3 = vmul.f32 1.442695, %v3494_v1 }
 0x7a2   :  { %v3478_v6 = vpop.xlane.xlu0 %3477 }
 0x7a3   :  { %6742 = vpow2.f32 %v3502_v3  ;;  %v3496_v7 = vsub.f32 %v3076_v34, %v3478_v6 }
 0x7a5   :  { %v3506_v9 = vmul.f32 1.442695, %v3496_v7 }
 0x7a6   :  { %v3484_v11 = vpop.xlane.xlu1 %3483  ;;  %v3481_v12 = vpop.xlane.xlu0 %3480 }
 0x7a7   :  { %6744 = vpow2.f32 %v3506_v9  ;;  %v3498_v13 = vsub.f32 %v3232_v38, %v3484_v11  ;;  %v3497_v15 = vsub.f32 %v3154_v16, %v3481_v12 }
 0x7a9   :  { %v3510_v18 = vmul.f32 1.442695, %v3498_v13  ;;  %v3508_v24 = vmul.f32 1.442695, %v3497_v15 }
 0x7aa   :  { %v3487_v26 = vpop.xlane.xlu0 %3486  ;;  %v3490_v41 = vpop.xlane.xlu1 %3489 }
 0x7ab   :  { %6746 = vpow2.f32 %v3510_v18  ;;  %v3499_v30 = vsub.f32 %v7445_v20, %v3487_v26  ;;  %v3500_v43 = vsub.f32 %v7455_v42, %v3490_v41 }
 0x7ac   :  { %6748 = vpow2.f32 %v3508_v24 }
 0x7ad   :  { %v6743_v32 = vpop.eup %6742  ;;  %v3512_v35 = vmul.f32 1.442695, %v3499_v30  ;;  %v3514_v45 = vmul.f32 1.442695, %v3500_v43 }
 0x7ae   :  { %v3518_v28 = vsel %vm167_vm2, %v6743_v32, 0.0  ;;  %v3493_v44 = vpop.xlane.xlu0 %3492  ;;  %v7544_v6 = vpop.permute.xlu1 %4443 }
 0x7af   :  { %3519 = vadd.xlane.f32.xlu1 %v3518_v28  ;;  %6750 = vpow2.f32 %v3512_v35  ;;  %v3501_v46 = vsub.f32 %v7450_v33, %v3493_v44 }
 0x7b0   :  { %6752 = vpow2.f32 %v3514_v45 }
 0x7b1   :  { %v6745_v34 = vpop.eup %6744  ;;  %v3516_v53 = vmul.f32 1.442695, %v3501_v46 }
 0x7b2   :  { %v3524_v36 = vsel %vm167_vm2, %v6745_v34, 0.0  ;;  %v7532_v33 = vpop.permute.xlu0 %4365 }
 0x7b3   :  { %3525 = vadd.xlane.f32.xlu1 %v3524_v36  ;;  %6754 = vpow2.f32 %v3516_v53 }
 0x7b5   :  { %v7494_v37 = vpop.eup %6746 }
 0x7b6   :  { %v7496_v16 = vpop.eup %6748  ;;  %v3530_v38 = vsel %vm167_vm2, %v7494_v37, 0.0 }
 0x7b7   :  { %3531 = vadd.xlane.f32.xlu1 %v3530_v38  ;;  %v3527_v20 = vsel %vm167_vm2, %v7496_v16, 0.0 }
 0x7b8   :  { %3528 = vadd.xlane.f32.xlu0 %v3527_v20 }
 0x7b9   :  { %v7502_v39 = vpop.eup %6750 }
 0x7ba   :  { %v3533_v40 = vsel %vm167_vm2, %v7502_v39, 0.0  ;;  %v7512_v54 = vpop.eup %6752 }
 0x7bb   :  { %v3536_v55 = vsel %vm167_vm2, %v7512_v54, 0.0 }
 0x7bc   :  { %3534 = vadd.xlane.f32.xlu0 %v3533_v40 }
 0x7bd   :  { %v7516_v57 = vpop.eup %6754 }
 0x7be   :  { %v3539_v59 = vsel %vm167_vm2, %v7516_v57, 0.0 }
 0x7c8   :  { %4441 = vrot.lane.b32.xlu1 %v6931_v21, %s6839_s23 }
 0x7d2   :  { %4363 = vrot.lane.b32.xlu0 %v6933_v23, %s6839_s23 }
 0x7ec   :  { %3537 = vadd.xlane.f32.xlu1 %v3536_v55 }
 0x7f1   :  { %3540 = vadd.xlane.f32.xlu0 %v3539_v59 }
 0x7fd   :  { %4599 = vrot.lane.b32.xlu1 %v6939_v25, %s6838_s22 }
 0x801   :  { %4597 = vrot.lane.b32.xlu1 %v6939_v25, %s6839_s23 }
 0x805   :  { %4755 = vrot.lane.b32.xlu1 %v6947_v29, %s6838_s22 }
 0x807   :  { %4521 = vrot.lane.b32.xlu0 %v6941_v27, %s6838_s22 }
 0x809   :  { %4753 = vrot.lane.b32.xlu1 %v6947_v29, %s6839_s23 }
 0x80b   :  { %4519 = vrot.lane.b32.xlu0 %v6941_v27, %s6839_s23 }
 0x80f   :  { %4677 = vrot.lane.b32.xlu0 %v6949_v31, %s6838_s22 }
 0x813   :  { %v3523_v42 = vpop.xlane.xlu0 %3522  ;;  %4675 = vrot.lane.b32.xlu0 %v6949_v31, %s6839_s23 }
 0x814   :  { %6756 = vrcp.f32 %v3523_v42 }
 0x81e   :  { %v6757_v1 = vpop.eup %6756 }
 0x81f   :  { %v3551_v3 = vmul.f32 %v6757_v1, %v7479_v56 }
 0x821   :  { %6511 = vmatmul.mubr.msk.f32.vlgmr.msra.gmra.mrb[48].mxu0 %vm167_vm2, %v3551_v3 }
 0x822   :  { %6519 = vmatpush3.msra.mxu0 %v7469_v48  ;;  %6520 = vmatprep.mubr.msk.f32.mxu0 %vm6829_vm1, %v6828_v14 }
 0x823   :  { %6528 = vmatprep.subr.mxu0 %v6828_v14 }
 0x83c   :  { %v3520_v7 = vpop.xlane.xlu1 %3519 }
 0x83d   :  { %6758 = vrcp.f32 %v3520_v7 }
 0x840   :  { %v3526_v9 = vpop.xlane.xlu1 %3525 }
 0x841   :  { %6760 = vrcp.f32 %v3526_v9 }
 0x844   :  { %v3532_v11 = vpop.xlane.xlu1 %3531 }
 0x845   :  { %6762 = vrcp.f32 %v3532_v11  ;;  %v3529_v12 = vpop.xlane.xlu0 %3528 }
 0x846   :  { %6764 = vrcp.f32 %v3529_v12 }
 0x847   :  { %v6759_v56 = vpop.eup %6758 }
 0x848   :  { %v3550_v13 = vmul.f32 %v6759_v56, %v6743_v32 }
 0x849   :  { %v3535_v15 = vpop.xlane.xlu0 %3534 }
 0x84a   :  { %6766 = vrcp.f32 %v3535_v15  ;;  %6506 = vmatmul.mubr.msk.f32.vlgmr.msra.gmra.mrb[40].mxu1 %vm167_vm2, %v3550_v13 }
 0x84b   :  { %v6761_v48 = vpop.eup %6760  ;;  %6514 = vmatpush3.msra.mxu1 %v7467_v47  ;;  %6515 = vmatprep.mubr.msk.f32.mxu1 %vm6829_vm1, %v6828_v14 }
 0x84c   :  { %v3552_v18 = vmul.f32 %v6761_v48, %v6745_v34  ;;  %6523 = vmatprep.subr.mxu1 %v6828_v14 }
 0x84d   :  { %v4364_v35 = vpop.permute.xlu0 %4363 }
 0x84e   :  { %6516 = vmatmul.mubr.msk.f32.vlgmr.msra.gmra.mrb[42].mxu1 %vm167_vm2, %v3552_v18 }
 0x84f   :  { %v6763_v24 = vpop.eup %6762  ;;  %6524 = vmatpush3.msra.mxu1 %v7483_v58  ;;  %6525 = vmatprep.mubr.msk.f32.mxu1 %vm6829_vm1, %v6828_v14 }
 0x850   :  { %v6765_v26 = vpop.eup %6764  ;;  %v3554_v30 = vmul.f32 %v6763_v24, %v7494_v37  ;;  %6533 = vmatprep.subr.mxu1 %v6828_v14 }
 0x851   :  { %v3553_v47 = vmul.f32 %v6765_v26, %v7496_v16 }
 0x852   :  { %6526 = vmatmul.mubr.msk.f32.vlgmr.msra.gmra.mrb[44].mxu1 %vm167_vm2, %v3554_v30 }
 0x853   :  { %6521 = vmatmul.mubr.msk.f32.vlgmr.msra.gmra.mrb[50].mxu0 %vm167_vm2, %v3553_v47  ;;  %6534 = vmatpush3.msra.mxu1 %v7485_v60 }
 0x854   :  { %v6767_v32 = vpop.eup %6766  ;;  %6529 = vmatpush3.msra.mxu0 %v7471_v49  ;;  %6530 = vmatprep.mubr.msk.f32.mxu0 %vm6829_vm1, %v6828_v14  ;;  %v4442_v49 = vpop.permute.xlu1 %4441 }
 0x855   :  { %v3555_v58 = vmul.f32 %v6767_v32, %v7502_v39  ;;  %6538 = vmatprep.subr.mxu0 %v6828_v14  ;;  %6535 = vmatprep.mubr.msk.f32.mxu1 %vm6829_vm1, %v6828_v14 }
 0x856   :  { %6543 = vmatprep.subr.mxu1 %v6828_v14 }
 0x857   :  { %6531 = vmatmul.mubr.msk.f32.vlgmr.msra.gmra.mrb[52].mxu0 %vm167_vm2, %v3555_v58 }
 0x858   :  { %6539 = vmatpush3.msra.mxu0 %v7473_v50  ;;  %6540 = vmatprep.mubr.msk.f32.mxu0 %vm6829_vm1, %v6828_v14 }
 0x859   :  { %6548 = vmatprep.subr.mxu0 %v6828_v14 }
 0x879   :  { %v3538_v60 = vpop.xlane.xlu1 %3537 }
 0x87a   :  { %6768 = vrcp.f32 %v3538_v60 }
 0x87d   :  { %v4600_v16 = vpop.permute.xlu1 %4599 }
 0x87e   :  { %v3541_v28 = vpop.xlane.xlu0 %3540 }
 0x87f   :  { %6770 = vrcp.f32 %v3541_v28 }
 0x882   :  { %v4522_v36 = vpop.permute.xlu0 %4521 }
 0x884   :  { %v6769_v34 = vpop.eup %6768 }
 0x885   :  { %v3556_v37 = vmul.f32 %v6769_v34, %v7512_v54 }
 0x886   :  { %v4520_v20 = vpop.permute.xlu0 %4519 }
 0x887   :  { %6536 = vmatmul.mubr.msk.f32.vlgmr.msra.gmra.mrb[46].mxu1 %vm167_vm2, %v3556_v37 }
 0x888   :  { %6544 = vmatpush3.xpose.msk.msra.mxu1 %vm167_vm2, %v7487_v61  ;;  %6545 = vmatprep.mubr.msk.f32.mxu1 %vm6829_vm1, %v6828_v14  ;;  %v4598_v61 = vpop.permute.xlu1 %4597 }
 0x889   :  { %v6771_v50 = vpop.eup %6770  ;;  %6553 = vmatprep.subr.mxu1 %v6828_v14 }
 0x88a   :  { %v3557_v38 = vmul.f32 %v6771_v50, %v7516_v57 }
 0x88b   :  { %6546 = vmatmul.mubr.msk.f32.vlgmr.msra.gmra.mrb[48].mxu1 %vm167_vm2, %v7489_v62  ;;  %v4678_v62 = vpop.permute.xlu0 %4677 }
 0x88c   :  { %6541 = vmatmul.mubr.msk.f32.vlgmr.msra.gmra.mrb[54].mxu0 %vm167_vm2, %v3557_v38  ;;  %6554 = vmatpush3.xpose.msk.msra.mxu1 %vm167_vm2, %v7532_v33 }
 0x88d   :  { %6549 = vmatpush3.xpose.msk.msra.mxu0 %vm167_vm2, %v7475_v51  ;;  %6550 = vmatprep.mubr.msk.f32.mxu0 %vm6829_vm1, %v6828_v14  ;;  %v4756_v51 = vpop.permute.xlu1 %4755 }
 0x88e   :  { %6555 = vmatprep.mubr.msk.f32.mxu1 %vm6829_vm1, %v6828_v14  ;;  %6558 = vmatprep.subr.mxu0 %v6828_v14 }
 0x88f   :  { %6563 = vmatprep.subr.mxu1 %v6828_v14  ;;  %6556 = vmatmul.mubr.msk.f32.vlgmr.msra.gmra.mrb[50].mxu1 %vm167_vm2, %v4364_v35 }
 0x890   :  { %6551 = vmatmul.mubr.msk.f32.vlgmr.msra.gmra.mrb[56].mxu0 %vm167_vm2, %v7477_v52  ;;  %6564 = vmatpush3.xpose.msk.msra.mxu1 %vm167_vm2, %v4522_v36  ;;  %v4676_v52 = vpop.permute.xlu0 %4675 }
 0x891   :  { %6559 = vmatpush3.xpose.msk.msra.mxu0 %vm167_vm2, %v7544_v6  ;;  %6560 = vmatprep.mubr.msk.f32.mxu0 %vm6829_vm1, %v6828_v14  ;;  %v4754_v39 = vpop.permute.xlu1 %4753 }
 0x892   :  { %6565 = vmatprep.mubr.msk.f32.mxu1 %vm6829_vm1, %v6828_v14  ;;  %6568 = vmatprep.subr.mxu0 %v6828_v14 }
 0x893   :  { %6573 = vmatprep.subr.mxu1 %v6828_v14  ;;  %6566 = vmatmul.mubr.msk.f32.vlgmr.msra.gmra.mrb[52].mxu1 %vm167_vm2, %v4520_v20 }
 0x894   :  { %6561 = vmatmul.mubr.msk.f32.vlgmr.msra.gmra.mrb[58].mxu0 %vm167_vm2, %v4442_v49  ;;  %6574 = vmatpush3.xpose.msk.msra.mxu1 %vm167_vm2, %v4678_v62 }
 0x895   :  { %6569 = vmatpush3.xpose.msk.msra.mxu0 %vm167_vm2, %v4600_v16  ;;  %6570 = vmatprep.mubr.msk.f32.mxu0 %vm6829_vm1, %v6828_v14 }
 0x896   :  { %6575 = vmatprep.mubr.msk.f32.mxu1 %vm6829_vm1, %v6828_v14  ;;  %6578 = vmatprep.subr.mxu0 %v6828_v14 }
 0x897   :  { %6576 = vmatmul.mubr.msk.f32.vlgmr.msra.gmra.mrb[54].mxu1 %vm167_vm2, %v4676_v52  ;;  %6583 = vmatprep.subr.mxu1 %v6828_v14 }
 0x898   :  { %6571 = vmatmul.mubr.msk.f32.vlgmr.msra.gmra.mrb[60].mxu0 %vm167_vm2, %v4598_v61  ;;  %6585 = vmatprep.mubr.msk.f32.mxu1 %vm6829_vm1, %v6828_v14 }
 0x899   :  { %6579 = vmatpush3.xpose.msk.msra.mxu0 %vm167_vm2, %v4756_v51  ;;  %6580 = vmatprep.mubr.msk.f32.mxu0 %vm6829_vm1, %v6828_v14 }
 0x89a   :  { %6588 = vmatprep.subr.mxu0 %v6828_v14 }
 0x89c   :  { %6581 = vmatmul.mubr.msk.f32.vlgmr.msra.gmra.mrb[62].mxu0 %vm167_vm2, %v4754_v39 }
 0x89d   :  { %6590 = vmatprep.mubr.msk.f32.mxu0 %vm6829_vm1, %v6828_v14 }
 0x8f4   :  { %v7628_v40 = vpop.f32.mrb[48].mxu0 }
 0x8f5   :  { %v6512_v41 = vpop.f32.mrb[49].mxu0 }
 0x91d   :  { %v7630_v43 = vpop.f32.mrb[40].mxu1 }
 0x91e   :  { %v6507_v44 = vpop.f32.mrb[41].mxu1 }
 0x921   :  { %v7632_v45 = vpop.f32.mrb[42].mxu1 }
 0x922   :  { %v6517_v46 = vpop.f32.mrb[43].mxu1 }
 0x925   :  { %v7634_v53 = vpop.f32.mrb[44].mxu1 }
 0x926   :  { %v7636_v54 = vpop.f32.mrb[50].mxu0  ;;  %v6527_v55 = vpop.f32.mrb[45].mxu1 }
 0x927   :  { %v6522_v57 = vpop.f32.mrb[51].mxu0 }
 0x92a   :  { %v7638_v59 = vpop.f32.mrb[52].mxu0 }
 0x92b   :  { %v6532_v33 = vpop.f32.mrb[53].mxu0 }
 0x95a   :  { %v7640_v42 = vpop.f32.mrb[46].mxu1 }
 0x95b   :  { %v6537_v1 = vpop.f32.mrb[47].mxu1 }
 0x95e   :  { %v4281_v3 = vpop.f32.mrb[48].mxu1 }
 0x95f   :  { %v7642_v6 = vpop.f32.mrb[54].mxu0  ;;  %v6547_v7 = vpop.f32.mrb[49].mxu1  ;;  %v4831_v9 = vsel %vm167_vm2, %v4281_v3, -inf }
 0x960   :  { %v6542_v11 = vpop.f32.mrb[55].mxu0  ;;  %4832 = vmax.xlane.f32.xlu0 %v4831_v9 }
 0x962   :  { %v4437_v12 = vpop.f32.mrb[50].mxu1 }
 0x963   :  { %v4359_v56 = vpop.f32.mrb[56].mxu0  ;;  %v6557_v13 = vpop.f32.mrb[51].mxu1  ;;  %v4837_v15 = vsel %vm167_vm2, %v4437_v12, -inf }
 0x964   :  { %v6552_v48 = vpop.f32.mrb[57].mxu0  ;;  %4838 = vmax.xlane.f32.xlu0 %v4837_v15  ;;  %v4834_v18 = vsel %vm167_vm2, %v4359_v56, -inf }
 0x965   :  { %4835 = vmax.xlane.f32.xlu1 %v4834_v18 }
 0x966   :  { %v4593_v24 = vpop.f32.mrb[52].mxu1 }
 0x967   :  { %v4515_v26 = vpop.f32.mrb[58].mxu0  ;;  %v6567_v30 = vpop.f32.mrb[53].mxu1  ;;  %v4843_v47 = vsel %vm167_vm2, %v4593_v24, -inf }
 0x968   :  { %v6562_v32 = vpop.f32.mrb[59].mxu0  ;;  %v4840_v58 = vsel %vm167_vm2, %v4515_v26, -inf }
 0x969   :  { %4841 = vmax.xlane.f32.xlu0 %v4840_v58  ;;  %4844 = vmax.xlane.f32.xlu1 %v4843_v47 }
 0x96a   :  { %v4749_v49 = vpop.f32.mrb[54].mxu1 }
 0x96b   :  { %v4671_v60 = vpop.f32.mrb[60].mxu0  ;;  %v6577_v35 = vpop.f32.mrb[55].mxu1  ;;  %v4849_v28 = vsel %vm167_vm2, %v4749_v49, -inf }
 0x96c   :  { %v6572_v34 = vpop.f32.mrb[61].mxu0  ;;  %v4846_v36 = vsel %vm167_vm2, %v4671_v60, -inf }
 0x96d   :  { %4847 = vmax.xlane.f32.xlu0 %v4846_v36  ;;  %4850 = vmax.xlane.f32.xlu1 %v4849_v28 }
 0x96f   :  { %v4827_v37 = vpop.f32.mrb[62].mxu0 }
 0x970   :  { %v6582_v50 = vpop.f32.mrb[63].mxu0  ;;  %v4852_v16 = vsel %vm167_vm2, %v4827_v37, -inf }
 0x971   :  { %4853 = vmax.xlane.f32.xlu0 %v4852_v16 }
 0x97e   :  { %4919 = vrot.lane.b32.xlu1 %v6925_v19, %s6840_s24 }
 0x982   :  { %5071 = vrot.lane.b32.xlu1 %v6933_v23, %s6840_s24 }
 0x986   :  { %5147 = vrot.lane.b32.xlu1 %v6931_v21, %s6840_s24 }
 0x987   :  { %4995 = vrot.lane.b32.xlu0 %v6923_v17, %s6840_s24 }
 0x98a   :  { %5299 = vrot.lane.b32.xlu1 %v6939_v25, %s6840_s24 }
 0x98b   :  { %5223 = vrot.lane.b32.xlu0 %v6941_v27, %s6840_s24 }
 0x9ed   :  { %v4833_v38 = vpop.xlane.xlu0 %4832 }
 0x9ee   :  { %v4855_v20 = vsub.f32 %v4281_v3, %v4833_v38 }
 0x9f0   :  { %v4863_v61 = vmul.f32 1.442695, %v4855_v20 }
 0x9f1   :  { %v4839_v62 = vpop.xlane.xlu0 %4838 }
 0x9f2   :  { %6772 = vpow2.f32 %v4863_v61  ;;  %v4836_v19 = vpop.xlane.xlu1 %4835  ;;  %v4857_v51 = vsub.f32 %v4437_v12, %v4839_v62 }
 0x9f3   :  { %v4856_v23 = vsub.f32 %v4359_v56, %v4836_v19 }
 0x9f4   :  { %v4867_v52 = vmul.f32 1.442695, %v4857_v51 }
 0x9f5   :  { %v4865_v39 = vmul.f32 1.442695, %v4856_v23 }
 0x9f6   :  { %6774 = vpow2.f32 %v4867_v52  ;;  %v4845_v21 = vpop.xlane.xlu1 %4844  ;;  %v4842_v41 = vpop.xlane.xlu0 %4841 }
 0x9f7   :  { %6776 = vpow2.f32 %v4865_v39  ;;  %v4859_v17 = vsub.f32 %v4593_v24, %v4845_v21  ;;  %v4858_v44 = vsub.f32 %v4515_v26, %v4842_v41 }
 0x9f9   :  { %v4871_v25 = vmul.f32 1.442695, %v4859_v17  ;;  %v4869_v46 = vmul.f32 1.442695, %v4858_v44 }
 0x9fa   :  { %v4851_v55 = vpop.xlane.xlu1 %4850  ;;  %v4848_v27 = vpop.xlane.xlu0 %4847 }
 0x9fb   :  { %6778 = vpow2.f32 %v4871_v25  ;;  %v4861_v57 = vsub.f32 %v4749_v49, %v4851_v55  ;;  %v4860_v33 = vsub.f32 %v4671_v60, %v4848_v27 }
 0x9fc   :  { %v7664_v1 = vpop.eup %6772  ;;  %6780 = vpow2.f32 %v4869_v46 }
 0x9fd   :  { %v4875_v3 = vmul.f32 1.442695, %v4861_v57  ;;  %v4873_v7 = vmul.f32 1.442695, %v4860_v33  ;;  %v4879_v9 = vsel %vm167_vm2, %v7664_v1, 0.0 }
 0x9fe   :  { %v4920_v11 = vpop.permute.xlu1 %4919  ;;  %v4854_v12 = vpop.xlane.xlu0 %4853  ;;  %4880 = vadd.xlane.f32.xlu1 %v4879_v9 }
 0x9ff   :  { %6782 = vpow2.f32 %v4875_v3  ;;  %v4862_v56 = vsub.f32 %v4827_v37, %v4854_v12  ;;  %6584 = vmatpush3.msra.mxu1 %v4920_v11  ;;  %v5576_v12 = vld [vmem:[%s8084_s2] sm:$0xff] }
 0xa00   :  { %v7668_v13 = vpop.eup %6774  ;;  %6784 = vpow2.f32 %v4873_v7  ;;  %6593 = vmatprep.subr.mxu1 %v6828_v14 }
 0xa01   :  { %v7671_v15 = vpop.eup %6776  ;;  %v4877_v48 = vmul.f32 1.442695, %v4862_v56  ;;  %v4885_v18 = vsel %vm167_vm2, %v7668_v13, 0.0  ;;  %v5577_v56 = vld [vmem:[%s8084_s2 + $0x8] sm:$0xff] }
 0xa02   :  { %v4996_v24 = vpop.permute.xlu0 %4995  ;;  %v4882_v26 = vsel %vm167_vm2, %v7671_v15, 0.0  ;;  %4886 = vadd.xlane.f32.xlu1 %v4885_v18 }
 0xa03   :  { %6786 = vpow2.f32 %v4877_v48  ;;  %4883 = vadd.xlane.f32.xlu0 %v4882_v26  ;;  %6589 = vmatpush3.msra.mxu0 %v4996_v24  ;;  %v5579_v48 = vld [vmem:[%s8084_s2 + $0x18] sm:$0xff] }
 0xa04   :  { %6598 = vmatprep.subr.mxu0 %v6828_v14 }
 0xa05   :  { %v7678_v30 = vpop.eup %6778 }
 0xa06   :  { %v7680_v47 = vpop.eup %6780  ;;  %v4891_v32 = vsel %vm167_vm2, %v7678_v30, 0.0 }
 0xa07   :  { %4892 = vadd.xlane.f32.xlu1 %v4891_v32  ;;  %v4888_v58 = vsel %vm167_vm2, %v7680_v47, 0.0 }
 0xa08   :  { %4889 = vadd.xlane.f32.xlu0 %v4888_v58 }
 0xa09   :  { %v7686_v49 = vpop.eup %6782 }
 0xa0a   :  { %v7688_v60 = vpop.eup %6784  ;;  %v4897_v35 = vsel %vm167_vm2, %v7686_v49, 0.0 }
 0xa0b   :  { %4898 = vadd.xlane.f32.xlu1 %v4897_v35  ;;  %v4894_v28 = vsel %vm167_vm2, %v7688_v60, 0.0 }
 0xa0c   :  { %4895 = vadd.xlane.f32.xlu0 %v4894_v28 }
 0xa0d   :  { %v7694_v34 = vpop.eup %6786 }
 0xa0e   :  { %v4900_v36 = vsel %vm167_vm2, %v7694_v34, 0.0 }
 0xa10   :  { %4901 = vadd.xlane.f32.xlu0 %v4900_v36 }
 0xa1c   :  { %5451 = vrot.lane.b32.xlu1 %v6947_v29, %s6840_s24  ;;  %v5072_v29 = vpop.permute.xlu1 %5071 }
 0xa20   :  { %2815 = vrot.lane.b32.xlu1 %v7430_v63, %s6841_s25 }
 0xa24   :  { %4176 = vrot.lane.b32.xlu1 %v7628_v40, %s6842_s26 }
 0xa26   :  { %5375 = vrot.lane.b32.xlu0 %v6949_v31, %s6840_s24  ;;  %v5148_v31 = vpop.permute.xlu1 %5147 }
 0xa28   :  { %2819 = vrot.lane.b32.xlu1 %v7438_v5, %s6841_s25 }
 0xa2a   :  { %2813 = vrot.lane.b32.xlu0 %v7432_v0, %s6841_s25  ;;  %v5300_v63 = vpop.permute.xlu1 %5299 }
 0xa2c   :  { %4180 = vrot.lane.b32.xlu1 %v7636_v54, %s6842_s26 }
 0xa2e   :  { %4174 = vrot.lane.b32.xlu0 %v7630_v43, %s6842_s26 }
 0xa30   :  { %2823 = vrot.lane.b32.xlu1 %v7440_v8, %s6841_s25 }
 0xa32   :  { %2817 = vrot.lane.b32.xlu0 %v7434_v2, %s6841_s25  ;;  %v5224_v2 = vpop.permute.xlu0 %5223 }
 0xa34   :  { %4184 = vrot.lane.b32.xlu1 %v7638_v59, %s6842_s26 }
 0xa36   :  { %4178 = vrot.lane.b32.xlu0 %v7632_v45, %s6842_s26 }
 0xa38   :  { %2827 = vrot.lane.b32.xlu1 %v7442_v10, %s6841_s25 }
 0xa3a   :  { %2821 = vrot.lane.b32.xlu0 %v7436_v4, %s6841_s25 }
 0xa3c   :  { %4188 = vrot.lane.b32.xlu1 %v7642_v6, %s6842_s26 }
 0xa3e   :  { %4182 = vrot.lane.b32.xlu0 %v7634_v53, %s6842_s26 }
 0xa42   :  { %2825 = vrot.lane.b32.xlu0 %v7447_v22, %s6841_s25 }
 0xa46   :  { %4186 = vrot.lane.b32.xlu0 %v7640_v42, %s6842_s26 }
 0xa8b   :  { %v4881_v0 = vpop.xlane.xlu1 %4880 }
 0xa8c   :  { %6788 = vrcp.f32 %v4881_v0 }
 0xa8f   :  { %v4887_v5 = vpop.xlane.xlu1 %4886 }
 0xa90   :  { %6790 = vrcp.f32 %v4887_v5  ;;  %v4884_v8 = vpop.xlane.xlu0 %4883 }
 0xa91   :  { %6792 = vrcp.f32 %v4884_v8 }
 0xa94   :  { %v4893_v10 = vpop.xlane.xlu1 %4892 }
 0xa95   :  { %6794 = vrcp.f32 %v4893_v10  ;;  %v4890_v4 = vpop.xlane.xlu0 %4889 }
 0xa96   :  { %v6789_v40 = vpop.eup %6788  ;;  %6796 = vrcp.f32 %v4890_v4 }
 0xa97   :  { %v4911_v43 = vmul.f32 %v6789_v40, %v7664_v1 }
 0xa98   :  { %v4899_v22 = vpop.xlane.xlu1 %4898 }
 0xa99   :  { %6798 = vrcp.f32 %v4899_v22  ;;  %v4896_v45 = vpop.xlane.xlu0 %4895  ;;  %6586 = vmatmul.mubr.msk.f32.vlgmr.msra.gmra.mrb[56].mxu1 %vm167_vm2, %v4911_v43 }
 0xa9a   :  { %v6791_v53 = vpop.eup %6790  ;;  %6800 = vrcp.f32 %v4896_v45  ;;  %6594 = vmatpush3.msra.mxu1 %v5072_v29  ;;  %6595 = vmatprep.mubr.msk.f32.mxu1 %vm6829_vm1, %v6828_v14 }
 0xa9b   :  { %v6793_v54 = vpop.eup %6792  ;;  %v4913_v59 = vmul.f32 %v6791_v53, %v7668_v13  ;;  %6603 = vmatprep.subr.mxu1 %v6828_v14  ;;  %v6651_v13 = vpack.c.bf16 %v5577_v56, %v5576_v12  ;;  %v6825_v56 = vld [vmem:[%s8083_s0 + $0x28] sm:$0xff] }
 0xa9c   :  { %v4912_v42 = vmul.f32 %v6793_v54, %v7671_v15  ;;  %v5452_v6 = vpop.permute.xlu1 %5451  ;;  %v5578_v15 = vld [vmem:[%s8084_s2 + $0x10] sm:$0xff] }
 0xa9d   :  { %v4902_v37 = vpop.xlane.xlu0 %4901  ;;  %6596 = vmatmul.mubr.msk.f32.vlgmr.msra.gmra.mrb[58].mxu1 %vm167_vm2, %v4913_v59  ;;  %v6655_v18 = vpack.c.bf16 %v5579_v48, %v5578_v15 }
 0xa9e   :  { %6802 = vrcp.f32 %v4902_v37  ;;  %6591 = vmatmul.mubr.msk.f32.vlgmr.msra.gmra.mrb[64].mxu0 %vm167_vm2, %v4912_v42  ;;  %6604 = vmatpush3.msra.mxu1 %v5224_v2 }
 0xa9f   :  { %v6795_v50 = vpop.eup %6794  ;;  %6599 = vmatpush3.msra.mxu0 %v5148_v31  ;;  %6600 = vmatprep.mubr.msk.f32.mxu0 %vm6829_vm1, %v6828_v14 }
 0xaa0   :  { %v6797_v16 = vpop.eup %6796  ;;  %v4915_v38 = vmul.f32 %v6795_v50, %v7678_v30  ;;  %v2816_v20 = vpop.permute.xlu1 %2815  ;;  %6605 = vmatprep.mubr.msk.f32.mxu1 %vm6829_vm1, %v6828_v14  ;;  %6608 = vmatprep.subr.mxu0 %v6828_v14 }
 0xaa1   :  { %v4914_v61 = vmul.f32 %v6797_v16, %v7680_v47  ;;  %2839 = vst.msk [vmem:[#allocation2 + $0x8] sm:$0xff] %vm2837_vm3, %v2816_v20  ;;  %v5376_v62 = vpop.permute.xlu0 %5375  ;;  %6613 = vmatprep.subr.mxu1 %v6828_v14  ;;  %v6120_v16 = vld [vmem:[%s8084_s2 + $0x20] ss:$0 sm:$0xff] }
 0xaa2   :  { %6606 = vmatmul.mubr.msk.f32.vlgmr.msra.gmra.mrb[60].mxu1 %vm167_vm2, %v4915_v38 }
 0xaa3   :  { %v6799_v19 = vpop.eup %6798  ;;  %6601 = vmatmul.mubr.msk.f32.vlgmr.msra.gmra.mrb[66].mxu0 %vm167_vm2, %v4914_v61  ;;  %6614 = vmatpush3.msra.mxu1 %v5376_v62 }
 0xaa4   :  { %v6801_v51 = vpop.eup %6800  ;;  %v4917_v23 = vmul.f32 %v6799_v19, %v7686_v49  ;;  %6609 = vmatpush3.msra.mxu0 %v5300_v63  ;;  %v4177_v52 = vpop.permute.xlu1 %4176  ;;  %6610 = vmatprep.mubr.msk.f32.mxu0 %vm6829_vm1, %v6828_v14  ;;  %v6820_v19 = vld [vmem:[%s8083_s0 + $0x8] sm:$0xff] }
 0xaa5   :  { %v4916_v39 = vmul.f32 %v6801_v51, %v7688_v60  ;;  %4200 = vst.msk [vmem:[#allocation2 + $0x8] sm:$0xff] %vm4198_vm4, %v4177_v52  ;;  %v2814_v21 = vpop.permute.xlu0 %2813  ;;  %6615 = vmatprep.mubr.msk.f32.mxu1 %vm6829_vm1, %v6828_v14  ;;  %6618 = vmatprep.subr.mxu0 %v6828_v14 }
 0xaa6   :  { %2838 = vst.msk [vmem:[#allocation2] sm:$0xff] %vm2837_vm3, %v2814_v21  ;;  %6616 = vmatmul.mubr.msk.f32.vlgmr.msra.gmra.mrb[62].mxu1 %vm167_vm2, %v4917_v23  ;;  %6652 = vmatprep.subr.bf16.mxu1 %v6651_v13  ;;  %v6821_v23 = vld [vmem:[%s8083_s0] sm:$0xff] }
 0xaa7   :  { %6611 = vmatmul.mubr.msk.f32.vlgmr.msra.gmra.mrb[68].mxu0 %vm167_vm2, %v4916_v39  ;;  %6654 = vmatpush3.bf16.msra.mxu1 %v6651_v13 }
 0xaa8   :  { %v6803_v41 = vpop.eup %6802  ;;  %6619 = vmatpush3.msra.mxu0 %v5452_v6  ;;  %v2820_v17 = vpop.permute.xlu1 %2819  ;;  %6620 = vmatprep.mubr.msk.f32.mxu0 %vm6829_vm1, %v6828_v14 }
 0xaa9   :  { %v4918_v44 = vmul.f32 %v6803_v41, %v7694_v34  ;;  %2841 = vst.msk [vmem:[#allocation2 + $0x18] sm:$0xff] %vm2837_vm3, %v2820_v17  ;;  %v4175_v25 = vpop.permute.xlu0 %4174  ;;  %6656 = vmatprep.subr.bf16.mxu1 %v6655_v18 }
 0xaaa   :  { %4199 = vst.msk [vmem:[#allocation2] sm:$0xff] %vm4198_vm4, %v4175_v25 }
 0xaab   :  { %6621 = vmatmul.mubr.msk.f32.vlgmr.msra.gmra.mrb[70].mxu0 %vm167_vm2, %v4918_v44  ;;  %6658 = vmatpush3.bf16.msra.mxu1 %v6655_v18 }
 0xaac   :  { %v4181_v46 = vpop.permute.xlu1 %4180 }
 0xaad   :  { %4202 = vst.msk [vmem:[#allocation2 + $0x18] sm:$0xff] %vm4198_vm4, %v4181_v46  ;;  %v2818_v55 = vpop.permute.xlu0 %2817  ;;  %v6822_v46 = vld [vmem:[%s8083_s0 + $0x18] sm:$0xff] }
 0xaae   :  { %2840 = vst.msk [vmem:[#allocation2 + $0x10] sm:$0xff] %vm2837_vm3, %v2818_v55 }
 0xab0   :  { %v2824_v27 = vpop.permute.xlu1 %2823 }
 0xab1   :  { %2843 = vst.msk [vmem:[#allocation2 + $0x28] sm:$0xff] %vm2837_vm3, %v2824_v27  ;;  %v4179_v57 = vpop.permute.xlu0 %4178 }
 0xab2   :  { %4201 = vst.msk [vmem:[#allocation2 + $0x10] sm:$0xff] %vm4198_vm4, %v4179_v57  ;;  %v6823_v57 = vld [vmem:[%s8083_s0 + $0x10] sm:$0xff] }
 0xab4   :  { %v4185_v14 = vpop.permute.xlu1 %4184 }
 0xab5   :  { %4204 = vst.msk [vmem:[#allocation2 + $0x28] sm:$0xff] %vm4198_vm4, %v4185_v14  ;;  %v2822_v33 = vpop.permute.xlu0 %2821 }
 0xab6   :  { %2842 = vst.msk [vmem:[#allocation2 + $0x20] sm:$0xff] %vm2837_vm3, %v2822_v33 }
 0xab8   :  { %v2828_v1 = vpop.permute.xlu1 %2827 }
 0xab9   :  { %2845 = vst.msk [vmem:[#allocation2 + $0x38] sm:$0xff] %vm2837_vm3, %v2828_v1  ;;  %v4183_v3 = vpop.permute.xlu0 %4182 }
 0xaba   :  { %4203 = vst.msk [vmem:[#allocation2 + $0x20] sm:$0xff] %vm4198_vm4, %v4183_v3 }
 0xabc   :  { %v4189_v7 = vpop.permute.xlu1 %4188 }
 0xabd   :  { %4206 = vst.msk [vmem:[#allocation2 + $0x38] sm:$0xff] %vm4198_vm4, %v4189_v7  ;;  %v2826_v9 = vpop.permute.xlu0 %2825 }
 0xabe   :  { %2844 = vst.msk [vmem:[#allocation2 + $0x30] sm:$0xff] %vm2837_vm3, %v2826_v9  ;;  %v6824_v9 = vld [vmem:[%s8083_s0 + $0x20] sm:$0xff] }
 0xac1   :  { %v4187_v11 = vpop.permute.xlu0 %4186 }
 0xac2   :  { %4205 = vst.msk [vmem:[#allocation2 + $0x30] sm:$0xff] %vm4198_vm4, %v4187_v11 }
 0xb6c   :  { %v4991_v24 = vpop.f32.mrb[56].mxu1 }
 0xb6d   :  { %v6587_v26 = vpop.f32.mrb[57].mxu1  ;;  %5535 = vrot.lane.b32.xlu0 %v4991_v24, %s6843_s9 }
 0xb70   :  { %v5143_v30 = vpop.f32.mrb[58].mxu1 }
 0xb71   :  { %v5067_v47 = vpop.f32.mrb[64].mxu0  ;;  %v6597_v32 = vpop.f32.mrb[59].mxu1  ;;  %5539 = vrot.lane.b32.xlu0 %v5143_v30, %s6843_s9  ;;  %v6826_v30 = vld [vmem:[%s8083_s0 + $0x30] sm:$0xff] }
 0xb72   :  { %5537 = vrot.lane.b32.xlu1 %v5067_v47, %s6843_s9  ;;  %v6592_v58 = vpop.f32.mrb[65].mxu0  ;;  %v6827_v32 = vld [vmem:[%s8083_s0 + $0x38] sm:$0xff] }
 0xb75   :  { %v5295_v49 = vpop.f32.mrb[60].mxu1 }
 0xb76   :  { %v5219_v60 = vpop.f32.mrb[66].mxu0  ;;  %5543 = vrot.lane.b32.xlu0 %v5295_v49, %s6843_s9  ;;  %v6607_v35 = vpop.f32.mrb[61].mxu1 }
 0xb77   :  { %5541 = vrot.lane.b32.xlu1 %v5219_v60, %s6843_s9  ;;  %v6602_v28 = vpop.f32.mrb[67].mxu0 }
 0xb79   :  { %v5447_v34 = vpop.f32.mrb[62].mxu1 }
 0xb7a   :  { %v5371_v36 = vpop.f32.mrb[68].mxu0  ;;  %5547 = vrot.lane.b32.xlu0 %v5447_v34, %s6843_s9  ;;  %v6617_v29 = vpop.f32.mrb[63].mxu1 }
 0xb7b   :  { %5545 = vrot.lane.b32.xlu1 %v5371_v36, %s6843_s9  ;;  %v6612_v31 = vpop.f32.mrb[69].mxu0 }
 0xb7e   :  { %v5523_v63 = vpop.f32.mrb[70].mxu0 }
 0xb7f   :  { %5549 = vrot.lane.b32.xlu1 %v5523_v63, %s6843_s9  ;;  %v6622_v0 = vpop.f32.mrb[71].mxu0 }
 0xbdf   :  { %v5536_v2 = vpop.permute.xlu0 %5535 }
 0xbe0   :  { %5560 = vst.msk [vmem:[#allocation2] sm:$0xff] %vm5559_vm5, %v5536_v2 }
 0xbe3   :  { %v5540_v5 = vpop.permute.xlu0 %5539 }
 0xbe4   :  { %v5538_v8 = vpop.permute.xlu1 %5537  ;;  %5562 = vst.msk [vmem:[#allocation2 + $0x10] sm:$0xff] %vm5559_vm5, %v5540_v5 }
 0xbe5   :  { %5561 = vst.msk [vmem:[#allocation2 + $0x8] sm:$0xff] %vm5559_vm5, %v5538_v8 }
 0xbe7   :  { %v5568_v10 = vld [vmem:[#allocation2] sm:$0xff] }
 0xbe8   :  { %v5544_v4 = vpop.permute.xlu0 %5543  ;;  %6631 = vmatprep.mubr.msk.f32.mxu1 %vm34_vm0, %v5568_v10 }
 0xbe9   :  { %v5542_v40 = vpop.permute.xlu1 %5541  ;;  %5564 = vst.msk [vmem:[#allocation2 + $0x20] sm:$0xff] %vm5559_vm5, %v5544_v4 }
 0xbea   :  { %5563 = vst.msk [vmem:[#allocation2 + $0x18] sm:$0xff] %vm5559_vm5, %v5542_v40 }
 0xbeb   :  { %v5570_v43 = vld [vmem:[#allocation2 + $0x10] sm:$0xff] }
 0xbec   :  { %v5548_v22 = vpop.permute.xlu0 %5547  ;;  %v5569_v45 = vld [vmem:[#allocation2 + $0x8] sm:$0xff] }
 0xbed   :  { %v5546_v53 = vpop.permute.xlu1 %5545  ;;  %5566 = vst.msk [vmem:[#allocation2 + $0x30] sm:$0xff] %vm5559_vm5, %v5548_v22  ;;  %6632 = vmatmul.mubr.msk.f32.vlgmr.msra.gmra.mrb[64].mxu1 %vm34_vm0, %v5569_v45 }
 0xbee   :  { %5565 = vst.msk [vmem:[#allocation2 + $0x28] sm:$0xff] %vm5559_vm5, %v5546_v53  ;;  %6634 = vmatprep.mubr.msk.f32.mxu1 %vm34_vm0, %v5570_v43 }
 0xbf0   :  { %v5572_v54 = vld [vmem:[#allocation2 + $0x20] sm:$0xff] }
 0xbf1   :  { %v5550_v59 = vpop.permute.xlu1 %5549  ;;  %v5571_v42 = vld [vmem:[#allocation2 + $0x18] sm:$0xff] }
 0xbf2   :  { %5567 = vst.msk [vmem:[#allocation2 + $0x38] sm:$0xff] %vm5559_vm5, %v5550_v59  ;;  %6635 = vmatmul.mubr.msk.f32.gmra.mrb[66].mxu1 %vm34_vm0, %v5571_v42 }
 0xbf3   :  { %6637 = vmatprep.mubr.msk.f32.mxu1 %vm34_vm0, %v5572_v54 }
 0xbf4   :  { %v5574_v6 = vld [vmem:[#allocation2 + $0x30] sm:$0xff] }
 0xbf5   :  { %v5573_v37 = vld [vmem:[#allocation2 + $0x28] sm:$0xff] }
 0xbf6   :  { %6638 = vmatmul.mubr.msk.f32.gmra.mrb[68].mxu1 %vm34_vm0, %v5573_v37 }
 0xbf7   :  { %6640 = vmatprep.mubr.msk.f32.mxu1 %vm34_vm0, %v5574_v6 }
 0xbf9   :  { %v5575_v50 = vld [vmem:[#allocation2 + $0x38] sm:$0xff] }
 0xbfa   :  { %6641 = vmatmul.mubr.msk.f32.gmra.mrb[70].mxu1 %vm34_vm0, %v5575_v50 }
 0xcc0   :  { %v6633_v38 = vpop.f32.mrb[64].mxu1 }
 0xcc1   :  { %v5681_v20 = vadd.f32 %v6633_v38, %v6120_v16  ;;  %v5675_v61 = vpop.f32.mrb[65].mxu1 }
 0xcc2   :  { %v5676_v62 = vadd.f32 %v6120_v16, %v5675_v61 }
 0xcc3   :  { %v5715_v51 = vadd.f32 %v6820_v19, %v5681_v20 }
 0xcc4   :  { %v5714_v52 = vadd.f32 %v6821_v23, %v5676_v62 }
 0xcc5   :  { %v6636_v39 = vpop.f32.mrb[66].mxu1  ;;  %v5725_v21 = vsel %vm34_vm0, %v5715_v51, 0.0 }
 0xcc6   :  { %v5691_v41 = vadd.f32 %v6636_v39, %v6120_v16  ;;  %v5685_v17 = vpop.f32.mrb[67].mxu1  ;;  %5726 = vadd.xlane.f32.xlu1 %v5725_v21  ;;  %v5722_v44 = vsel %vm34_vm0, %v5714_v52, 0.0 }
 0xcc7   :  { %v5686_v25 = vadd.f32 %v6120_v16, %v5685_v17  ;;  %5723 = vadd.xlane.f32.xlu0 %v5722_v44 }
 0xcc8   :  { %v5717_v55 = vadd.f32 %v6822_v46, %v5691_v41 }
 0xcc9   :  { %v6639_v27 = vpop.f32.mrb[68].mxu1  ;;  %v5716_v14 = vadd.f32 %v6823_v57, %v5686_v25 }
 0xcca   :  { %v5701_v33 = vadd.f32 %v6639_v27, %v6120_v16  ;;  %v5695_v1 = vpop.f32.mrb[69].mxu1  ;;  %v5731_v3 = vsel %vm34_vm0, %v5717_v55, 0.0 }
 0xccb   :  { %v5696_v7 = vadd.f32 %v6120_v16, %v5695_v1  ;;  %5732 = vadd.xlane.f32.xlu0 %v5731_v3  ;;  %v5728_v18 = vsel %vm34_vm0, %v5716_v14, 0.0 }
 0xccc   :  { %v5719_v13 = vadd.f32 %v6825_v56, %v5701_v33 }
 0xccd   :  { %v5718_v11 = vadd.f32 %v6824_v9, %v5696_v7  ;;  %v6642_v12 = vpop.f32.mrb[70].mxu1 }
 0xcce   :  { %v5711_v15 = vadd.f32 %v6642_v12, %v6120_v16  ;;  %v5705_v48 = vpop.f32.mrb[71].mxu1  ;;  %v5737_v49 = vsel %vm34_vm0, %v5719_v13, 0.0 }
 0xccf   :  { %v5706_v24 = vadd.f32 %v6120_v16, %v5705_v48  ;;  %5729 = vadd.xlane.f32.xlu0 %v5728_v18  ;;  %v5734_v26 = vsel %vm34_vm0, %v5718_v11, 0.0 }
 0xcd0   :  { %5735 = vadd.xlane.f32.xlu1 %v5734_v26  ;;  %v5721_v58 = vadd.f32 %v6827_v32, %v5711_v15 }
 0xcd1   :  { %v5720_v47 = vadd.f32 %v6826_v30, %v5706_v24  ;;  %v7872_v30 = vld [vmem:[%s8085_s3] ss:$0 sm:$0xff] }
 0xcd2   :  { %v5743_v35 = vsel %vm34_vm0, %v5721_v58, 0.0 }
 0xcd3   :  { %5738 = vadd.xlane.f32.xlu0 %v5737_v49  ;;  %v5740_v60 = vsel %vm34_vm0, %v5720_v47, 0.0 }
 0xcd4   :  { %5741 = vadd.xlane.f32.xlu1 %v5740_v60  ;;  %v7878_v60 = vld [vmem:[%s8085_s3 + $0x1] ss:$0 sm:$0xff]  ;;  %s6844_s3 = smov 32  }
 0xcd7   :  { %5744 = vadd.xlane.f32.xlu0 %v5743_v35 }
 0xd53   :  { %v5727_v28 = vpop.xlane.xlu1 %5726 }
 0xd54   :  { %v5748_v34 = vmul.f32 0.03125, %v5727_v28  ;;  %v5724_v36 = vpop.xlane.xlu0 %5723 }
 0xd55   :  { %v5747_v29 = vmul.f32 0.03125, %v5724_v36 }
 0xd56   :  { %v7829_v31 = vsub.f32 %v5715_v51, %v5748_v34 }
 0xd57   :  { %v7831_v63 = vsub.f32 %v5714_v52, %v5747_v29 }
 0xd58   :  { %v5733_v0 = vpop.xlane.xlu0 %5732  ;;  %v5764_v2 = vmul.f32 %v7829_v31, %v7829_v31 }
 0xd59   :  { %v5750_v5 = vmul.f32 0.03125, %v5733_v0  ;;  %v5763_v8 = vmul.f32 %v7831_v63, %v7831_v63 }
 0xd5a   :  { %v5774_v10 = vsel %vm34_vm0, %v5764_v2, 0.0 }
 0xd5b   :  { %v7838_v4 = vsub.f32 %v5717_v55, %v5750_v5  ;;  %5775 = vadd.xlane.f32.xlu0 %v5774_v10  ;;  %v5771_v40 = vsel %vm34_vm0, %v5763_v8, 0.0 }
 0xd5c   :  { %5772 = vadd.xlane.f32.xlu1 %v5771_v40  ;;  %v5730_v43 = vpop.xlane.xlu0 %5729 }
 0xd5d   :  { %v5736_v22 = vpop.xlane.xlu1 %5735  ;;  %v5749_v45 = vmul.f32 0.03125, %v5730_v43  ;;  %v5766_v53 = vmul.f32 %v7838_v4, %v7838_v4 }
 0xd5e   :  { %v5751_v54 = vmul.f32 0.03125, %v5736_v22 }
 0xd5f   :  { %v7843_v59 = vsub.f32 %v5716_v14, %v5749_v45  ;;  %v5780_v42 = vsel %vm34_vm0, %v5766_v53, 0.0 }
 0xd60   :  { %v7846_v6 = vsub.f32 %v5718_v11, %v5751_v54  ;;  %5781 = vadd.xlane.f32.xlu0 %v5780_v42  ;;  %v5739_v37 = vpop.xlane.xlu0 %5738 }
 0xd61   :  { %v5742_v50 = vpop.xlane.xlu1 %5741  ;;  %v5752_v16 = vmul.f32 0.03125, %v5739_v37  ;;  %v5765_v38 = vmul.f32 %v7843_v59, %v7843_v59 }
 0xd62   :  { %v5753_v20 = vmul.f32 0.03125, %v5742_v50  ;;  %v5767_v19 = vmul.f32 %v7846_v6, %v7846_v6 }
 0xd63   :  { %v7850_v61 = vsub.f32 %v5719_v13, %v5752_v16  ;;  %v5777_v62 = vsel %vm34_vm0, %v5765_v38, 0.0 }
 0xd64   :  { %v7855_v51 = vsub.f32 %v5720_v47, %v5753_v20  ;;  %5778 = vadd.xlane.f32.xlu1 %v5777_v62  ;;  %v5745_v23 = vpop.xlane.xlu0 %5744  ;;  %v5783_v41 = vsel %vm34_vm0, %v5767_v19, 0.0 }
 0xd65   :  { %v5754_v52 = vmul.f32 0.03125, %v5745_v23  ;;  %v5768_v39 = vmul.f32 %v7850_v61, %v7850_v61 }
 0xd66   :  { %v5769_v44 = vmul.f32 %v7855_v51, %v7855_v51 }
 0xd67   :  { %v7859_v21 = vsub.f32 %v5721_v58, %v5754_v52  ;;  %v5786_v17 = vsel %vm34_vm0, %v5768_v39, 0.0 }
 0xd68   :  { %5784 = vadd.xlane.f32.xlu1 %v5783_v41  ;;  %5787 = vadd.xlane.f32.xlu0 %v5786_v17  ;;  %v5789_v46 = vsel %vm34_vm0, %v5769_v44, 0.0 }
 0xd69   :  { %v5770_v25 = vmul.f32 %v7859_v21, %v7859_v21 }
 0xd6b   :  { %v5792_v55 = vsel %vm34_vm0, %v5770_v25, 0.0 }
 0xd6c   :  { %5790 = vadd.xlane.f32.xlu1 %v5789_v46  ;;  %5793 = vadd.xlane.f32.xlu0 %v5792_v55 }
 0xde8   :  { %v5776_v27 = vpop.xlane.xlu0 %5775 }
 0xde9   :  { %v5796_v57 = vmul.f32 0.03125, %v5776_v27  ;;  %v5773_v14 = vpop.xlane.xlu1 %5772 }
 0xdea   :  { %v5795_v33 = vmul.f32 0.03125, %v5773_v14 }
 0xdeb   :  { %v5804_v1 = vadd.f32 1e-05, %v5796_v57 }
 0xdec   :  { %v5803_v3 = vadd.f32 1e-05, %v5795_v33 }
 0xded   :  { %6804 = vrsqrt.f32 %v5804_v1  ;;  %v5782_v7 = vpop.xlane.xlu0 %5781 }
 0xdee   :  { %6806 = vrsqrt.f32 %v5803_v3  ;;  %v5798_v9 = vmul.f32 0.03125, %v5782_v7 }
 0xdf0   :  { %v5806_v11 = vadd.f32 1e-05, %v5798_v9 }
 0xdf1   :  { %v5779_v12 = vpop.xlane.xlu1 %5778 }
 0xdf2   :  { %6808 = vrsqrt.f32 %v5806_v11  ;;  %v5797_v56 = vmul.f32 0.03125, %v5779_v12 }
 0xdf4   :  { %v5805_v13 = vadd.f32 1e-05, %v5797_v56 }
 0xdf5   :  { %v5785_v15 = vpop.xlane.xlu1 %5784  ;;  %v5788_v48 = vpop.xlane.xlu0 %5787 }
 0xdf6   :  { %6810 = vrsqrt.f32 %v5805_v13  ;;  %v5799_v18 = vmul.f32 0.03125, %v5785_v15  ;;  %v5800_v24 = vmul.f32 0.03125, %v5788_v48 }
 0xdf7   :  { %v6805_v26 = vpop.eup %6804 }
 0xdf8   :  { %v6807_v47 = vpop.eup %6806  ;;  %v5820_v32 = vmul.f32 %v6805_v26, %v7829_v31  ;;  %v5807_v58 = vadd.f32 1e-05, %v5799_v18  ;;  %v5808_v49 = vadd.f32 1e-05, %v5800_v24 }
 0xdf9   :  { %v5819_v35 = vmul.f32 %v6807_v47, %v7831_v63  ;;  %v5791_v28 = vpop.xlane.xlu1 %5790  ;;  %v5794_v34 = vpop.xlane.xlu0 %5793 }
 0xdfa   :  { %v5833_v36 = vmul.f32 %v7872_v30, %v5820_v32  ;;  %6812 = vrsqrt.f32 %v5807_v58  ;;  %v5801_v29 = vmul.f32 0.03125, %v5791_v28  ;;  %v5802_v0 = vmul.f32 0.03125, %v5794_v34 }
 0xdfb   :  { %v5832_v2 = vmul.f32 %v7872_v30, %v5819_v35  ;;  %6814 = vrsqrt.f32 %v5808_v49 }
 0xdfc   :  { %v6809_v31 = vpop.eup %6808  ;;  %v7884_v5 = vadd.f32 %v7878_v60, %v5833_v36  ;;  %v5809_v8 = vadd.f32 1e-05, %v5801_v29  ;;  %v5810_v10 = vadd.f32 1e-05, %v5802_v0 }
 0xdfd   :  { %v7887_v40 = vadd.f32 %v7878_v60, %v5832_v2  ;;  %v5822_v63 = vmul.f32 %v6809_v31, %v7838_v4 }
 0xdfe   :  { %6816 = vrsqrt.f32 %v5809_v8  ;;  %v5976_v43 = vrot.slane %v7884_v5, 5  ;;  %v5958_v22 = vrot.slane %v7884_v5, 4  ;;  %v5923_v45 = vrot.slane %v7884_v5, 2 }
 0xdff   :  { %v5835_v53 = vmul.f32 %v7872_v30, %v5822_v63  ;;  %6818 = vrsqrt.f32 %v5810_v10  ;;  %v5975_v54 = vrot.slane %v7887_v40, 6  ;;  %v5957_v42 = vrot.slane %v7887_v40, 5 }
 0xe00   :  { %v6811_v37 = vpop.eup %6810  ;;  %v5884_v50 = vrot.slane %v7887_v40, 1  ;;  %v5922_v4 = vrot.slane %v7887_v40, 3  ;;  %v5903_v16 = vrot.slane %v7887_v40, 2  ;;  %v5904_v38 = vrot.slane %v7884_v5, 1 }
 0xe01   :  { %v7901_v20 = vadd.f32 %v7878_v60, %v5835_v53  ;;  %v5821_v62 = vmul.f32 %v6811_v37, %v7843_v59  ;;  %v5977_v19 = vsel %vm5862_vm6, %v5976_v43, %v5975_v54  ;;  %v5959_v23 = vsel %vm5862_vm6, %v5958_v22, %v5957_v42 }
 0xe02   :  { %v5885_v52 = vsel %vm5862_vm6, %v7884_v5, %v5884_v50  ;;  %v5993_v39 = vrot.slane %v7887_v40, 7  ;;  %v5924_v44 = vsel %vm5862_vm6, %v5923_v45, %v5922_v4  ;;  %v5905_v59 = vsel %vm5862_vm6, %v5904_v38, %v5903_v16 }
 0xe03   :  { %v5834_v41 = vmul.f32 %v7872_v30, %v5821_v62  ;;  %v5980_v17 = vrot.slane %v7901_v20, 3  ;;  %v5962_v46 = vrot.slane %v7901_v20, 2  ;;  %v5888_v55 = vrot.slane %v7901_v20, 6 }
 0xe04   :  { %v6813_v25 = vpop.eup %6812  ;;  %v5907_v27 = vrot.slane %v7901_v20, 7  ;;  %v5994_v57 = vrot.slane %v7884_v5, 6  ;;  %v5998_v3 = vrot.slane %v7901_v20, 4  ;;  %v5941_v7 = vrot.slane %v7887_v40, 4 }
 0xe05   :  { %v6815_v14 = vpop.eup %6814  ;;  %v7918_v33 = vadd.f32 %v7878_v60, %v5834_v41  ;;  %v5823_v1 = vmul.f32 %v6813_v25, %v7846_v6  ;;  %v5942_v12 = vrot.slane %v7884_v5, 3  ;;  %v5861_v56 = vrot.slane %v7884_v5, 7 }
 0xe06   :  { %v5824_v9 = vmul.f32 %v6815_v14, %v7850_v61  ;;  %v7925_v11 = vsel %vm5862_vm6, %v5994_v57, %v5993_v39 }
 0xe07   :  { %v5836_v13 = vmul.f32 %v7872_v30, %v5823_v1  ;;  %v5978_v15 = vrot.slane %v7918_v33, 4  ;;  %v5960_v6 = vrot.slane %v7918_v33, 3  ;;  %v5886_v48 = vrot.slane %v7918_v33, 7 }
 0xe08   :  { %v6817_v18 = vpop.eup %6816  ;;  %v5837_v24 = vmul.f32 %v7872_v30, %v5824_v9  ;;  %v5925_v61 = vrot.slane %v7918_v33, 1  ;;  %v5906_v26 = vsel %vm5865_vm7, %v7918_v33, %v5905_v59  ;;  %v5996_v47 = vrot.slane %v7918_v33, 5 }
 0xe09   :  { %v6819_v32 = vpop.eup %6818  ;;  %v7939_v58 = vadd.f32 %v7878_v60, %v5836_v13  ;;  %v5825_v49 = vmul.f32 %v6817_v18, %v7855_v51  ;;  %v5979_v35 = vsel %vm5865_vm7, %v5978_v15, %v5977_v19  ;;  %v5961_v28 = vsel %vm5865_vm7, %v5960_v6, %v5959_v23 }
 0xe0a   :  { %v7945_v34 = vadd.f32 %v7878_v60, %v5837_v24  ;;  %v5826_v36 = vmul.f32 %v6819_v32, %v7859_v21  ;;  %v5981_v29 = vsel %vm5868_vm8, %v5980_v17, %v5979_v35  ;;  %v5963_v0 = vsel %vm5868_vm8, %v5962_v46, %v5961_v28 }
 0xe0b   :  { %v5838_v2 = vmul.f32 %v7872_v30, %v5825_v49  ;;  %v5982_v31 = vrot.slane %v7939_v58, 2  ;;  %v5964_v8 = vrot.slane %v7939_v58, 1  ;;  %v5887_v51 = vsel %vm5865_vm7, %v5886_v48, %v5885_v52 }
 0xe0c   :  { %v5839_v10 = vmul.f32 %v7872_v30, %v5826_v36  ;;  %v5984_v63 = vrot.slane %v7945_v34, 1  ;;  %v5889_v43 = vsel %vm5868_vm8, %v5888_v55, %v5887_v51  ;;  %v5890_v21 = vrot.slane %v7939_v58, 5 }
 0xe0d   :  { %v7959_v22 = vadd.f32 %v7878_v60, %v5838_v2  ;;  %v5983_v45 = vsel %vm5871_vm10, %v5982_v31, %v5981_v29  ;;  %v5965_v53 = vsel %vm5871_vm10, %v5964_v8, %v5963_v0  ;;  %v5892_v54 = vrot.slane %v7945_v34, 4 }
 0xe0e   :  { %v7965_v42 = vadd.f32 %v7878_v60, %v5839_v10  ;;  %v5985_v30 = vsel %vm5874_vm9, %v5984_v63, %v5983_v45  ;;  %v5966_v37 = vsel %vm5874_vm9, %v7945_v34, %v5965_v53  ;;  %v5891_v50 = vsel %vm5871_vm10, %v5890_v21, %v5889_v43 }
 0xe0f   :  { %v5986_v4 = vsel %vm5877_vm11, %v7959_v22, %v5985_v30  ;;  %v5967_v16 = vrot.slane %v7959_v22, 7  ;;  %v5893_v38 = vsel %vm5874_vm9, %v5892_v54, %v5891_v50  ;;  %v5894_v62 = vrot.slane %v7959_v22, 3 }
 0xe10   :  { %v5987_v19 = vrot.slane %v7965_v42, 7  ;;  %v5969_v60 = vrot.slane %v7965_v42, 6  ;;  %v5896_v23 = vrot.slane %v7965_v42, 2  ;;  %v5926_v52 = vsel %vm5865_vm7, %v5925_v61, %v5924_v44 }
 0xe11   :  { %v5968_v39 = vsel %vm5877_vm11, %v5967_v16, %v5966_v37  ;;  %v5895_v41 = vsel %vm5877_vm11, %v5894_v62, %v5893_v38  ;;  %v5927_v17 = vsel %vm5868_vm8, %v7901_v20, %v5926_v52  ;;  %v5928_v59 = vrot.slane %v7939_v58, 7 }
 0xe12   :  { %v5988_v25 = vsel %vm5880_vm12, %v5987_v19, %v5986_v4  ;;  %v5970_v46 = vsel %vm5880_vm12, %v5969_v60, %v5968_v39  ;;  %v5897_v55 = vsel %vm5880_vm12, %v5896_v23, %v5895_v41  ;;  %v5930_v57 = vrot.slane %v7945_v34, 6 }
 0xe13   :  { %5989 = vrot.lane.b32.xlu1 %v5988_v25, %s6831_s1  ;;  %5971 = vrot.lane.b32.xlu0 %v5970_v46, %s6844_s3  ;;  %v5929_v44 = vsel %vm5871_vm10, %v5928_v59, %v5927_v17  ;;  %v5932_v14 = vrot.slane %v7959_v22, 5  ;;  %v5934_v1 = vrot.slane %v7965_v42, 4  ;;  %v5908_v9 = vsel %vm5868_vm8, %v5907_v27, %v5906_v26 }
 0xe14   :  { %v5931_v13 = vsel %vm5874_vm9, %v5930_v57, %v5929_v44  ;;  %v5909_v15 = vrot.slane %v7939_v58, 6  ;;  %v5911_v6 = vrot.slane %v7945_v34, 5  ;;  %v5913_v48 = vrot.slane %v7959_v22, 4 }
 0xe15   :  { %v5933_v18 = vsel %vm5877_vm11, %v5932_v14, %v5931_v13  ;;  %v5915_v24 = vrot.slane %v7965_v42, 3  ;;  %v5997_v61 = vsel %vm5865_vm7, %v5996_v47, %v7925_v11  ;;  %v6000_v32 = vrot.slane %v7939_v58, 3 }
 0xe16   :  { %v5935_v49 = vsel %vm5880_vm12, %v5934_v1, %v5933_v18  ;;  %v5910_v27 = vsel %vm5871_vm10, %v5909_v15, %v5908_v9  ;;  %v5999_v26 = vsel %vm5868_vm8, %v5998_v3, %v5997_v61  ;;  %v6002_v35 = vrot.slane %v7945_v34, 2 }
 0xe17   :  { %5898 = vrot.lane.b32.xlu1 %v5897_v55, %s6844_s3  ;;  %5936 = vrot.lane.b32.xlu0 %v5935_v49, %s6830_s15  ;;  %v5912_v28 = vsel %vm5874_vm9, %v5911_v6, %v5910_v27  ;;  %v6001_v36 = vsel %vm5871_vm10, %v6000_v32, %v5999_v26  ;;  %v6004_v11 = vrot.slane %v7959_v22, 1  ;;  %v5946_v47 = vrot.slane %v7901_v20, 1 }
 0xe18   :  { %v5914_v29 = vsel %vm5877_vm11, %v5913_v48, %v5912_v28  ;;  %v6003_v0 = vsel %vm5874_vm9, %v6002_v35, %v6001_v36  ;;  %v5943_v3 = vsel %vm5862_vm6, %v5942_v12, %v5941_v7  ;;  %v5944_v2 = vrot.slane %v7918_v33, 2 }
 0xe19   :  { %v5916_v31 = vsel %vm5880_vm12, %v5915_v24, %v5914_v29  ;;  %v6005_v8 = vsel %vm5877_vm11, %v6004_v11, %v6003_v0  ;;  %v5949_v51 = vrot.slane %v7945_v34, 7  ;;  %v5951_v10 = vrot.slane %v7959_v22, 6 }
 0xe1a   :  { %v5945_v63 = vsel %vm5865_vm7, %v5944_v2, %v5943_v3  ;;  %v5953_v43 = vrot.slane %v7965_v42, 5  ;;  %v5863_v21 = vsel %vm5862_vm6, %v5861_v56, %v7887_v40  ;;  %v5864_v7 = vrot.slane %v7918_v33, 6 }
 0xe1b   :  { %5917 = vrot.lane.b32.xlu1 %v5916_v31, %s6831_s1  ;;  %v5947_v12 = vsel %vm5868_vm8, %v5946_v47, %v5945_v63  ;;  %v5867_v45 = vrot.slane %v7901_v20, 5  ;;  %v5870_v53 = vrot.slane %v7939_v58, 4  ;;  %v5873_v54 = vrot.slane %v7945_v34, 3 }
 0xe1c   :  { %v5948_v30 = vsel %vm5871_vm10, %v7939_v58, %v5947_v12  ;;  %v5866_v37 = vsel %vm5865_vm7, %v5864_v7, %v5863_v21  ;;  %v5876_v5 = vrot.slane %v7959_v22, 2  ;;  %v5879_v56 = vrot.slane %v7965_v42, 1 }
 0xe1d   :  { %v5950_v40 = vsel %vm5874_vm9, %v5949_v51, %v5948_v30  ;;  %v5869_v33 = vsel %vm5868_vm8, %v5867_v45, %v5866_v37  ;;  %v6006_v20 = vsel %vm5880_vm12, %v7965_v42, %v6005_v8 }
 0xe1e   :  { %v5952_v50 = vsel %vm5877_vm11, %v5951_v10, %v5950_v40  ;;  %v5872_v34 = vsel %vm5871_vm10, %v5870_v53, %v5869_v33 }
 0xe1f   :  { %6007 = vrot.lane.b32.xlu1 %v6006_v20, %s6830_s15  ;;  %v5954_v58 = vsel %vm5880_vm12, %v5953_v43, %v5952_v50  ;;  %v5875_v4 = vsel %vm5874_vm9, %v5873_v54, %v5872_v34 }
 0xe20   :  { %5956 = vst.msk [vmem:[%s8086_s4 + $0x8] sm:$0xff] %vm34_vm0, %v5954_v58  ;;  %v5878_v22 = vsel %vm5877_vm11, %v5876_v5, %v5875_v4 }
 0xe21   :  { %v5881_v16 = vsel %vm5880_vm12, %v5879_v56, %v5878_v22 }
 0xe22   :  { %5883 = vst.msk [vmem:[%s8086_s4] sm:$0xff] %vm34_vm0, %v5881_v16 }
 0xe85   :  { %v5990_v42 = vpop.permute.xlu1 %5989  ;;  %v5972_v38 = vpop.permute.xlu0 %5971 }
 0xe86   :  { %5974 = vst.msk [vmem:[%s8086_s4 + $0x8] sm:$0xff] %vm5901_vm13, %v5972_v38 }
 0xe87   :  { %5992 = vst.msk [vmem:[%s8086_s4 + $0x8] sm:$0xff] %vm5920_vm14, %v5990_v42 }
 0xe89   :  { %v5899_v62 = vpop.permute.xlu1 %5898  ;;  %v5937_v60 = vpop.permute.xlu0 %5936 }
 0xe8a   :  { %5902 = vst.msk [vmem:[%s8086_s4] sm:$0xff] %vm5901_vm13, %v5899_v62 }
 0xe8d   :  { %v5918_v19 = vpop.permute.xlu1 %5917 }
 0xe8e   :  { %5921 = vst.msk [vmem:[%s8086_s4] sm:$0xff] %vm5920_vm14, %v5918_v19 }
 0xe8f   :  { %5940 = vst.msk [vmem:[%s8086_s4] sm:$0xff] %vm5939_vm15, %v5937_v60 }
 0xe91   :  { %v6008_v23 = vpop.permute.xlu1 %6007 }
 0xe92   :  { %6010 = vst.msk [vmem:[%s8086_s4 + $0x8] sm:$0xff] %vm5939_vm15, %v6008_v23 }

</bundles_post_ra>
